<compile_context>
chip_gen: v7x
topology: tpu7x:2x2x1
jax: 0.10.0
libtpu: 0.0.40
codegen_flags: <defaults>
</compile_context>

<pallas_src>
import jax
import jax.numpy as jnp
from jax.experimental import pallas as pl
from jax.experimental.pallas import tpu as pltpu


# ----------------------------------------------------------------------------
# Pallas kernels
# ----------------------------------------------------------------------------
def _pconv_kernel(x_ref, w_ref, b_ref, o_ref):
    # x_ref: (1, Cin, TN) bf16   w_ref: (Cout, Cin) bf16   b_ref: (Cout, 1) f32
    # o_ref: (1, Cout, TN) f32   (pixel axis on lanes -> lane-dense stores)
    acc = jnp.dot(w_ref[...], x_ref[0], preferred_element_type=jnp.float32)
    o_ref[0] = (acc + b_ref[...]).astype(o_ref.dtype)


def conv1x1_pallas(x, w, b=None):
    """1x1 convolution on NCHW input as a weight-stationary channel matmul."""
    B, Cin, H, W = x.shape
    Cout = w.shape[1]
    HW = H * W
    HW_pad = ((HW + 127) // 128) * 128
    # Largest power-of-two pixel tile (<= 1024) that divides the padded axis.
    TN = 128
    for cand in (1024, 512, 256, 128):
        if HW_pad % cand == 0:
            TN = cand
            break

    xr = x.reshape(B, Cin, HW)
    if HW_pad != HW:
        xr = jnp.pad(xr, ((0, 0), (0, 0), (0, HW_pad - HW)))
    xb = xr.astype(jnp.bfloat16)
    wt = jnp.transpose(w).astype(jnp.bfloat16)                 # (Cout, Cin)
    if b is None:
        b = jnp.zeros((Cout,), jnp.float32)
    b2 = b.reshape(Cout, 1).astype(jnp.float32)

    out = pl.pallas_call(
        _pconv_kernel,
        out_shape=jax.ShapeDtypeStruct((B, Cout, HW_pad), jnp.float32),
        grid=(B, HW_pad // TN),
        in_specs=[
            pl.BlockSpec((1, Cin, TN), lambda bi, i: (bi, 0, i)),
            pl.BlockSpec((Cout, Cin), lambda bi, i: (0, 0)),
            pl.BlockSpec((Cout, 1), lambda bi, i: (0, 0)),
        ],
        out_specs=pl.BlockSpec((1, Cout, TN), lambda bi, i: (bi, 0, i)),
        compiler_params=pltpu.CompilerParams(
            dimension_semantics=("parallel", "parallel")),
    )(xb, wt, b2)
    return out[:, :, :HW].reshape(B, Cout, H, W)


def _attn_kernel(lf_ref, rf_ref, rc_ref, m_ref, lc_ref):
    # lf_ref / rf_ref: (TB, W, 2C) bf16     rc_ref: (TB, W, C) bf16
    # m_ref: (TB, W, W) f32                 lc_ref: (TB, W, C) f32
    s = jnp.einsum("bqc,bkc->bqk", lf_ref[...], rf_ref[...],
                   preferred_element_type=jnp.float32)          # (TB, W, W)
    s_max = jnp.max(s, axis=-1, keepdims=True)
    p = jnp.exp(s - s_max)
    denom = jnp.sum(p, axis=-1, keepdims=True)
    m = p * pl.reciprocal(denom, approx=True)                   # softmax in f32
    m_ref[...] = m.astype(m_ref.dtype)
    lc = jnp.einsum("bqk,bkc->bqc", m.astype(rc_ref.dtype), rc_ref[...],
                    preferred_element_type=jnp.float32)         # (TB, W, C)
    lc_ref[...] = lc.astype(lc_ref.dtype)


def cross_attention_pallas(lf, rf, rc, *, vmem_block_budget=20 * 1024 * 1024):
    """score = lf @ rf^T (per scanline); M = softmax(score, -1); left_color = M @ rc.

    lf, rf: (BH, W, 2C)   rc: (BH, W, C).  TB scanlines per grid step; TB is
    capped so the double-buffered blocks stay inside a conservative VMEM budget
    (important on v7x's 64 MiB VMEM since the W x W block grows quadratically).
    """
    BH, W, C2 = lf.shape
    C = rc.shape[2]
    # Double-buffered bytes per scanline (bf16 inputs, f32 outputs).
    per_row = 2 * (2 * W * C2 * 2 + W * C * 2 + W * W * 4 + W * C * 4)
    tb_cap = max(1, vmem_block_budget // max(per_row, 1))
    TB = 1
    for cand in (32, 16, 8, 4, 2, 1):
        if BH % cand == 0 and cand <= tb_cap:
            TB = cand
            break

    lf16 = lf.astype(jnp.bfloat16)
    rf16 = rf.astype(jnp.bfloat16)
    rc16 = rc.astype(jnp.bfloat16)

    M, lc = pl.pallas_call(
        _attn_kernel,
        out_shape=(
            jax.ShapeDtypeStruct((BH, W, W), jnp.float32),
            jax.ShapeDtypeStruct((BH, W, C), jnp.float32),
        ),
        grid=(BH // TB,),
        in_specs=[
            pl.BlockSpec((TB, W, C2), lambda i: (i, 0, 0)),
            pl.BlockSpec((TB, W, C2), lambda i: (i, 0, 0)),
            pl.BlockSpec((TB, W, C), lambda i: (i, 0, 0)),
        ],
        out_specs=(
            pl.BlockSpec((TB, W, W), lambda i: (i, 0, 0)),
            pl.BlockSpec((TB, W, C), lambda i: (i, 0, 0)),
        ),
        compiler_params=pltpu.CompilerParams(
            dimension_semantics=("parallel",),
            vmem_limit_bytes=48 * 1024 * 1024),
    )(lf16, rf16, rc16)
    return M, lc


# ----------------------------------------------------------------------------
# Plain-JAX glue: 3x3 conv, norms, activations
# ----------------------------------------------------------------------------
def conv3x3(x, w, b=None):
    y = jax.lax.conv_general_dilated(
        x, w, window_strides=(1, 1), padding=((1, 1), (1, 1)),
        dimension_numbers=("NCHW", "OIHW", "NCHW"))
    if b is not None:
        y = y + b.reshape(1, -1, 1, 1)
    return y


def leaky_relu(x, slope):
    return jnp.where(x >= 0, x, slope * x)


def group_norm(x, num_groups, gamma, beta, eps=1e-5):
    B, C, H, W = x.shape
    xg = x.reshape(B, num_groups, C // num_groups, H, W)
    mean = jnp.mean(xg, axis=(2, 3, 4), keepdims=True)
    var = jnp.var(xg, axis=(2, 3, 4), keepdims=True)
    xn = ((xg - mean) / jnp.sqrt(var + eps)).reshape(B, C, H, W)
    return xn * gamma.reshape(1, -1, 1, 1) + beta.reshape(1, -1, 1, 1)


def instance_norm(x, gamma, beta, eps=1e-5):
    mean = jnp.mean(x, axis=(2, 3), keepdims=True)
    var = jnp.var(x, axis=(2, 3), keepdims=True)
    xn = (x - mean) / jnp.sqrt(var + eps)
    return xn * gamma.reshape(1, -1, 1, 1) + beta.reshape(1, -1, 1, 1)


# ----------------------------------------------------------------------------
# Parameter init (deterministic, synthetic)
# ----------------------------------------------------------------------------
class _KeyGen:
    def __init__(self, key):
        self.key = key

    def __call__(self):
        self.key, sub = jax.random.split(self.key)
        return sub


def _w(kg, shape, scale=0.05):
    return (jax.random.normal(kg(), shape, jnp.float32) * scale).astype(jnp.float32)


def init_hin(kg, cin, cout):
    return dict(
        conv1_w=_w(kg, (cout, cin, 3, 3)), conv1_b=jnp.zeros((cout,), jnp.float32),
        conv2_w=_w(kg, (cout, cout, 3, 3)), conv2_b=jnp.zeros((cout,), jnp.float32),
        in_g=jnp.ones((cout // 2,), jnp.float32), in_b=jnp.zeros((cout // 2,), jnp.float32),
        id_w=_w(kg, (cin, cout)), id_b=jnp.zeros((cout,), jnp.float32),
    )


def init_res(kg, cin, cmid, cout):
    return dict(
        conv1_w=_w(kg, (cmid, cin, 3, 3)), conv1_b=jnp.zeros((cmid,), jnp.float32),
        conv2_w=_w(kg, (cout, cmid, 3, 3)), conv2_b=jnp.zeros((cout,), jnp.float32),
        sc_w=_w(kg, (cin, cout)), sc_b=jnp.zeros((cout,), jnp.float32),
    )


def init_conv_gn(kg, cin, cout):
    return dict(
        w=_w(kg, (cin, cout)), b=jnp.zeros((cout,), jnp.float32),
        gn_g=jnp.ones((cout,), jnp.float32), gn_b=jnp.zeros((cout,), jnp.float32),
    )


def init_colorization(key, channels):
    kg = _KeyGen(key)
    c, c2 = channels, channels * 2
    return dict(
        conv_fea=init_hin(kg, c2, c2),
        convL_1=init_conv_gn(kg, c2, c2),
        convR_1=init_conv_gn(kg, c2, c2),
        convR_2=init_res(kg, c2, c, c),
        convL_2=init_conv_gn(kg, c, c),
        convL_3=init_conv_gn(kg, c, c),
        rbo1=init_hin(kg, c2 + 1, c),
        rbo2=init_hin(kg, c, c),
        rbo3=init_hin(kg, c, c),
        out_conv1_w=_w(kg, (c, c, 3, 3)),
        out_gn_g=jnp.ones((c,), jnp.float32), out_gn_b=jnp.zeros((c,), jnp.float32),
        out_conv2_w=_w(kg, (c, 3)),
    )


# ----------------------------------------------------------------------------
# Blocks & forward
# ----------------------------------------------------------------------------
def hin_block(p, x):
    out = conv3x3(x, p["conv1_w"], p["conv1_b"])
    half = out.shape[1] // 2
    o1 = instance_norm(out[:, :half], p["in_g"], p["in_b"])
    out = jnp.concatenate([o1, out[:, half:]], axis=1)
    out = leaky_relu(out, 0.2)
    out = leaky_relu(conv3x3(out, p["conv2_w"], p["conv2_b"]), 0.2)
    return out + conv1x1_pallas(x, p["id_w"], p["id_b"])


def res_block(p, x):
    out = leaky_relu(conv3x3(x, p["conv1_w"], p["conv1_b"]), 0.1)
    out = conv3x3(out, p["conv2_w"], p["conv2_b"])
    return out + conv1x1_pallas(x, p["sc_w"], p["sc_b"])


def conv_gn(p, x, groups):
    return group_norm(conv1x1_pallas(x, p["w"], p["b"]), groups, p["gn_g"], p["gn_b"])


@jax.jit
def colorization_forward(params, left0, right0, left1, right1, left2, right2,
                         left_mono, left_pre, TR):
    del left_pre, TR  # unused, as in the reference forward
    b, c, h, w = left0.shape

    left_fea = jnp.concatenate([left1, left2], axis=1)
    right_fea = jnp.concatenate([right1, right2], axis=1)
    left_fea = conv_gn(params["convL_1"], hin_block(params["conv_fea"], left_fea), 16)
    right_fea = conv_gn(params["convR_1"], hin_block(params["conv_fea"], right_fea), 16)

    # rearrange 'B C H W -> (B H) W C' for BOTH feature maps; the kernel
    # contracts on the channel axis directly (no wrapper-side (B H) C W copy).
    lf = jnp.transpose(left_fea, (0, 2, 3, 1)).reshape(b * h, w, 2 * c)
    rf = jnp.transpose(right_fea, (0, 2, 3, 1)).reshape(b * h, w, 2 * c)

    right_color = res_block(params["convR_2"], jnp.concatenate([right0, right2], axis=1))
    rc = jnp.transpose(right_color, (0, 2, 3, 1)).reshape(b * h, w, c)

    M, left_color = cross_attention_pallas(lf, rf, rc)

    # rearrange '(B H) W C -> B C H W'
    left_color = jnp.transpose(left_color.reshape(b, h, w, c), (0, 3, 1, 2))
    left_color = conv_gn(params["convL_3"], left_color, 16)
    left_shortcut = conv_gn(params["convL_2"], left0, 16)

    x = jnp.concatenate([left_mono, left_shortcut, left_color], axis=1)
    x = hin_block(params["rbo1"], x)
    x = hin_block(params["rbo2"], x)
    x = hin_block(params["rbo3"], x)

    x = conv3x3(x, params["out_conv1_w"])                 # bias=False
    x = leaky_relu(group_norm(x, 8, params["out_gn_g"], params["out_gn_b"]), 0.1)
    output = conv1x1_pallas(x, params["out_conv2_w"], None)  # bias=False, -> 3 channels
    return M, output


# ----------------------------------------------------------------------------
if __name__ == "__main__":
    B, C, H, W = 2, 16, 8, 8
    key = jax.random.PRNGKey(0)
    params = init_colorization(key, C)

    kg = _KeyGen(jax.random.PRNGKey(1))
    mk = lambda shape: jax.random.normal(kg(), shape, jnp.float32)
    left0, right0 = mk((B, C, H, W)), mk((B, C, H, W))
    left1, right1 = mk((B, C, H, W)), mk((B, C, H, W))
    left2, right2 = mk((B, C, H, W)), mk((B, C, H, W))
    left_mono = mk((B, 1, H, W))
    left_pre, TR = mk((B, C, H, W)), mk((B, C, H, W))

    M, out = colorization_forward(params, left0, right0, left1, right1,
                                  left2, right2, left_mono, left_pre, TR)
    jax.block_until_ready((M, out))
    assert M.shape == (B * H, W, W) and out.shape == (B, 3, H, W)
    assert bool(jnp.all(jnp.isfinite(M))) and bool(jnp.all(jnp.isfinite(out)))
    print("KERNEL_OK")
</pallas_src>

<mosaic_0001>
module attributes {stable_mosaic.version = 11 : i64} {
  func.func @_pconv_kernel(%arg0: i32, %arg1: i32, %arg2: memref<1x32x128xbf16, #tpu.memory_space<vmem>>, %arg3: memref<32x32xbf16, #tpu.memory_space<vmem>>, %arg4: memref<32x1xf32, #tpu.memory_space<vmem>>, %arg5: memref<1x32x128xf32, #tpu.memory_space<vmem>>) attributes {dimension_semantics = [#tpu.dimension_semantics<parallel>, #tpu.dimension_semantics<parallel>], iteration_bounds = array<i64: 2, 1>, scalar_prefetch = 0 : i64, scratch_operands = 0 : i64, tpu.core_type = #tpu.core_type<tc>, window_params = [{transform_indices = @transform_0, window_bounds = array<i64: 1, 32, 128>}, {pipeline_mode = #tpu.pipeline_mode<synchronous>, transform_indices = @transform_1, window_bounds = array<i64: 32, 32>}, {pipeline_mode = #tpu.pipeline_mode<synchronous>, transform_indices = @transform_2, window_bounds = array<i64: 32, 1>}, {transform_indices = @transform_3, window_bounds = array<i64: 1, 32, 128>}]} {
    %c0 = arith.constant 0 : index
    %c0_0 = arith.constant 0 : index
    %0 = vector.load %arg3[%c0, %c0_0] : memref<32x32xbf16, #tpu.memory_space<vmem>>, vector<32x32xbf16>
    %c0_1 = arith.constant 0 : index
    %c0_2 = arith.constant 0 : index
    %c0_3 = arith.constant 0 : index
    %1 = vector.load %arg2[%c0_1, %c0_2, %c0_3] : memref<1x32x128xbf16, #tpu.memory_space<vmem>>, vector<1x32x128xbf16>
    %2 = vector.shape_cast %1 : vector<1x32x128xbf16> to vector<32x128xbf16>
    %cst = arith.constant dense<0.000000e+00> : vector<32x128xf32>
    %3 = tpu.matmul %0, %2, %cst {dimension_numbers = #tpu.dot_dimension_numbers<[1], [0], [0], [1], [0, 0, 1, 1], [], []>} : vector<32x32xbf16>, vector<32x128xbf16>, vector<32x128xf32> -> vector<32x128xf32>
    %c0_4 = arith.constant 0 : index
    %c0_5 = arith.constant 0 : index
    %4 = vector.load %arg4[%c0_4, %c0_5] : memref<32x1xf32, #tpu.memory_space<vmem>>, vector<32x1xf32>
    %5 = vector.broadcast %4 : vector<32x1xf32> to vector<32x128xf32>
    %6 = arith.addf %3, %5 : vector<32x128xf32>
    %c0_6 = arith.constant 0 : index
    %c0_7 = arith.constant 0 : index
    %c0_8 = arith.constant 0 : index
    %7 = vector.load %arg5[%c0_6, %c0_7, %c0_8] : memref<1x32x128xf32, #tpu.memory_space<vmem>>, vector<1x32x128xf32>
    %8 = vector.shape_cast %7 : vector<1x32x128xf32> to vector<32x128xf32>
    %9 = vector.shape_cast %6 : vector<32x128xf32> to vector<1x32x128xf32>
    tpu.vector_store %arg5[%c0_6, %c0_7, %c0_8], %9 {strides = array<i32>} : memref<1x32x128xf32, #tpu.memory_space<vmem>>, vector<1x32x128xf32>,
    return
  }
  func.func @transform_0(%arg0: i32, %arg1: i32) -> (i32, i32, i32) {
    %c0_i32 = arith.constant 0 : i32
    %c0_i32_0 = arith.constant 0 : i32
    return %arg0, %c0_i32, %arg1 : i32, i32, i32
  }
  func.func @transform_1(%arg0: i32, %arg1: i32) -> (i32, i32) {
    %c0_i32 = arith.constant 0 : i32
    %c0_i32_0 = arith.constant 0 : i32
    %c0_i32_1 = arith.constant 0 : i32
    return %c0_i32, %c0_i32_0 : i32, i32
  }
  func.func @transform_2(%arg0: i32, %arg1: i32) -> (i32, i32) {
    %c0_i32 = arith.constant 0 : i32
    %c0_i32_0 = arith.constant 0 : i32
    %c0_i32_1 = arith.constant 0 : i32
    return %c0_i32, %c0_i32_0 : i32, i32
  }
  func.func @transform_3(%arg0: i32, %arg1: i32) -> (i32, i32, i32) {
    %c0_i32 = arith.constant 0 : i32
    %c0_i32_0 = arith.constant 0 : i32
    return %arg0, %c0_i32, %arg1 : i32, i32, i32
  }
}

module attributes {stable_mosaic.version = 11 : i64} {
  func.func @_pconv_kernel(%arg0: i32, %arg1: i32, %arg2: memref<1x32x128xbf16, #tpu.memory_space<vmem>>, %arg3: memref<16x32xbf16, #tpu.memory_space<vmem>>, %arg4: memref<16x1xf32, #tpu.memory_space<vmem>>, %arg5: memref<1x16x128xf32, #tpu.memory_space<vmem>>) attributes {dimension_semantics = [#tpu.dimension_semantics<parallel>, #tpu.dimension_semantics<parallel>], iteration_bounds = array<i64: 2, 1>, scalar_prefetch = 0 : i64, scratch_operands = 0 : i64, tpu.core_type = #tpu.core_type<tc>, window_params = [{transform_indices = @transform_0, window_bounds = array<i64: 1, 32, 128>}, {pipeline_mode = #tpu.pipeline_mode<synchronous>, transform_indices = @transform_1, window_bounds = array<i64: 16, 32>}, {pipeline_mode = #tpu.pipeline_mode<synchronous>, transform_indices = @transform_2, window_bounds = array<i64: 16, 1>}, {transform_indices = @transform_3, window_bounds = array<i64: 1, 16, 128>}]} {
    %c0 = arith.constant 0 : index
    %c0_0 = arith.constant 0 : index
    %0 = vector.load %arg3[%c0, %c0_0] : memref<16x32xbf16, #tpu.memory_space<vmem>>, vector<16x32xbf16>
    %c0_1 = arith.constant 0 : index
    %c0_2 = arith.constant 0 : index
    %c0_3 = arith.constant 0 : index
    %1 = vector.load %arg2[%c0_1, %c0_2, %c0_3] : memref<1x32x128xbf16, #tpu.memory_space<vmem>>, vector<1x32x128xbf16>
    %2 = vector.shape_cast %1 : vector<1x32x128xbf16> to vector<32x128xbf16>
    %cst = arith.constant dense<0.000000e+00> : vector<16x128xf32>
    %3 = tpu.matmul %0, %2, %cst {dimension_numbers = #tpu.dot_dimension_numbers<[1], [0], [0], [1], [0, 0, 1, 1], [], []>} : vector<16x32xbf16>, vector<32x128xbf16>, vector<16x128xf32> -> vector<16x128xf32>
    %c0_4 = arith.constant 0 : index
    %c0_5 = arith.constant 0 : index
    %4 = vector.load %arg4[%c0_4, %c0_5] : memref<16x1xf32, #tpu.memory_space<vmem>>, vector<16x1xf32>
    %5 = vector.broadcast %4 : vector<16x1xf32> to vector<16x128xf32>
    %6 = arith.addf %3, %5 : vector<16x128xf32>
    %c0_6 = arith.constant 0 : index
    %c0_7 = arith.constant 0 : index
    %c0_8 = arith.constant 0 : index
    %7 = vector.load %arg5[%c0_6, %c0_7, %c0_8] : memref<1x16x128xf32, #tpu.memory_space<vmem>>, vector<1x16x128xf32>
    %8 = vector.shape_cast %7 : vector<1x16x128xf32> to vector<16x128xf32>
    %9 = vector.shape_cast %6 : vector<16x128xf32> to vector<1x16x128xf32>
    tpu.vector_store %arg5[%c0_6, %c0_7, %c0_8], %9 {strides = array<i32>} : memref<1x16x128xf32, #tpu.memory_space<vmem>>, vector<1x16x128xf32>,
    return
  }
  func.func @transform_0(%arg0: i32, %arg1: i32) -> (i32, i32, i32) {
    %c0_i32 = arith.constant 0 : i32
    %c0_i32_0 = arith.constant 0 : i32
    return %arg0, %c0_i32, %arg1 : i32, i32, i32
  }
  func.func @transform_1(%arg0: i32, %arg1: i32) -> (i32, i32) {
    %c0_i32 = arith.constant 0 : i32
    %c0_i32_0 = arith.constant 0 : i32
    %c0_i32_1 = arith.constant 0 : i32
    return %c0_i32, %c0_i32_0 : i32, i32
  }
  func.func @transform_2(%arg0: i32, %arg1: i32) -> (i32, i32) {
    %c0_i32 = arith.constant 0 : i32
    %c0_i32_0 = arith.constant 0 : i32
    %c0_i32_1 = arith.constant 0 : i32
    return %c0_i32, %c0_i32_0 : i32, i32
  }
  func.func @transform_3(%arg0: i32, %arg1: i32) -> (i32, i32, i32) {
    %c0_i32 = arith.constant 0 : i32
    %c0_i32_0 = arith.constant 0 : i32
    return %arg0, %c0_i32, %arg1 : i32, i32, i32
  }
}

module attributes {stable_mosaic.version = 11 : i64} {
  func.func @_attn_kernel(%arg0: i32, %arg1: memref<16x8x32xbf16, #tpu.memory_space<vmem>>, %arg2: memref<16x8x32xbf16, #tpu.memory_space<vmem>>, %arg3: memref<16x8x16xbf16, #tpu.memory_space<vmem>>, %arg4: memref<16x8x8xf32, #tpu.memory_space<vmem>>, %arg5: memref<16x8x16xf32, #tpu.memory_space<vmem>>) attributes {dimension_semantics = [#tpu.dimension_semantics<parallel>], iteration_bounds = array<i64: 1>, scalar_prefetch = 0 : i64, scratch_operands = 0 : i64, tpu.core_type = #tpu.core_type<tc>, window_params = [{transform_indices = @transform_0, window_bounds = array<i64: 16, 8, 32>}, {transform_indices = @transform_1, window_bounds = array<i64: 16, 8, 32>}, {transform_indices = @transform_2, window_bounds = array<i64: 16, 8, 16>}, {transform_indices = @transform_3, window_bounds = array<i64: 16, 8, 8>}, {transform_indices = @transform_4, window_bounds = array<i64: 16, 8, 16>}]} {
    %c0 = arith.constant 0 : index
    %c0_0 = arith.constant 0 : index
    %c0_1 = arith.constant 0 : index
    %0 = vector.load %arg1[%c0, %c0_0, %c0_1] : memref<16x8x32xbf16, #tpu.memory_space<vmem>>, vector<16x8x32xbf16>
    %c0_2 = arith.constant 0 : index
    %c0_3 = arith.constant 0 : index
    %c0_4 = arith.constant 0 : index
    %1 = vector.load %arg2[%c0_2, %c0_3, %c0_4] : memref<16x8x32xbf16, #tpu.memory_space<vmem>>, vector<16x8x32xbf16>
    "tpu.trace_start"() <{level = 10 : i32, message = "bqc,bkc->bqk"}> : () -> ()
    %cst = arith.constant dense<0.000000e+00> : vector<16x8x8xf32>
    %2 = tpu.matmul %0, %1, %cst {dimension_numbers = #tpu.dot_dimension_numbers<[2], [2], [1], [1], [0, 0, 0, 1, 1, 1], [0], [0]>} : vector<16x8x32xbf16>, vector<16x8x32xbf16>, vector<16x8x8xf32> -> vector<16x8x8xf32>
    "tpu.trace_stop"() : () -> ()
    %cst_5 = arith.constant dense<0xFF800000> : vector<16x8xf32>
    %3 = vector.multi_reduction <maximumf>, %2, %cst_5 [2] : vector<16x8x8xf32> to vector<16x8xf32>
    %4 = vector.shape_cast %3 : vector<16x8xf32> to vector<16x8x1xf32>
    %5 = vector.broadcast %4 : vector<16x8x1xf32> to vector<16x8x8xf32>
    %6 = arith.subf %2, %5 : vector<16x8x8xf32>
    %7 = math.exp %6 : vector<16x8x8xf32>
    %cst_6 = arith.constant dense<0.000000e+00> : vector<16x8xf32>
    %8 = vector.multi_reduction <add>, %7, %cst_6 [2] : vector<16x8x8xf32> to vector<16x8xf32>
    %9 = vector.shape_cast %8 : vector<16x8xf32> to vector<16x8x1xf32>
    %10 = tpu.reciprocal %9 {approx = true} : vector<16x8x1xf32> -> vector<16x8x1xf32>
    %11 = vector.broadcast %10 : vector<16x8x1xf32> to vector<16x8x8xf32>
    %12 = arith.mulf %7, %11 : vector<16x8x8xf32>
    %c0_7 = arith.constant 0 : index
    %c0_8 = arith.constant 0 : index
    %c0_9 = arith.constant 0 : index
    %13 = vector.load %arg4[%c0_7, %c0_8, %c0_9] : memref<16x8x8xf32, #tpu.memory_space<vmem>>, vector<16x8x8xf32>
    tpu.vector_store %arg4[%c0_7, %c0_8, %c0_9], %12 {strides = array<i32>} : memref<16x8x8xf32, #tpu.memory_space<vmem>>, vector<16x8x8xf32>,
    %14 = arith.truncf %12 : vector<16x8x8xf32> to vector<16x8x8xbf16>
    %c0_10 = arith.constant 0 : index
    %c0_11 = arith.constant 0 : index
    %c0_12 = arith.constant 0 : index
    %15 = vector.load %arg3[%c0_10, %c0_11, %c0_12] : memref<16x8x16xbf16, #tpu.memory_space<vmem>>, vector<16x8x16xbf16>
    "tpu.trace_start"() <{level = 10 : i32, message = "bqk,bkc->bqc"}> : () -> ()
    %cst_13 = arith.constant dense<0.000000e+00> : vector<16x8x16xf32>
    %16 = tpu.matmul %14, %15, %cst_13 {dimension_numbers = #tpu.dot_dimension_numbers<[2], [1], [1], [2], [0, 0, 0, 1, 1, 2], [0], [0]>} : vector<16x8x8xbf16>, vector<16x8x16xbf16>, vector<16x8x16xf32> -> vector<16x8x16xf32>
    "tpu.trace_stop"() : () -> ()
    %c0_14 = arith.constant 0 : index
    %c0_15 = arith.constant 0 : index
    %c0_16 = arith.constant 0 : index
    %17 = vector.load %arg5[%c0_14, %c0_15, %c0_16] : memref<16x8x16xf32, #tpu.memory_space<vmem>>, vector<16x8x16xf32>
    tpu.vector_store %arg5[%c0_14, %c0_15, %c0_16], %16 {strides = array<i32>} : memref<16x8x16xf32, #tpu.memory_space<vmem>>, vector<16x8x16xf32>,
    return
  }
  func.func @transform_0(%arg0: i32) -> (i32, i32, i32) {
    %c0_i32 = arith.constant 0 : i32
    %c0_i32_0 = arith.constant 0 : i32
    %c0_i32_1 = arith.constant 0 : i32
    return %arg0, %c0_i32, %c0_i32_0 : i32, i32, i32
  }
  func.func @transform_1(%arg0: i32) -> (i32, i32, i32) {
    %c0_i32 = arith.constant 0 : i32
    %c0_i32_0 = arith.constant 0 : i32
    %c0_i32_1 = arith.constant 0 : i32
    return %arg0, %c0_i32, %c0_i32_0 : i32, i32, i32
  }
  func.func @transform_2(%arg0: i32) -> (i32, i32, i32) {
    %c0_i32 = arith.constant 0 : i32
    %c0_i32_0 = arith.constant 0 : i32
    %c0_i32_1 = arith.constant 0 : i32
    return %arg0, %c0_i32, %c0_i32_0 : i32, i32, i32
  }
  func.func @transform_3(%arg0: i32) -> (i32, i32, i32) {
    %c0_i32 = arith.constant 0 : i32
    %c0_i32_0 = arith.constant 0 : i32
    %c0_i32_1 = arith.constant 0 : i32
    return %arg0, %c0_i32, %c0_i32_0 : i32, i32, i32
  }
  func.func @transform_4(%arg0: i32) -> (i32, i32, i32) {
    %c0_i32 = arith.constant 0 : i32
    %c0_i32_0 = arith.constant 0 : i32
    %c0_i32_1 = arith.constant 0 : i32
    return %arg0, %c0_i32, %c0_i32_0 : i32, i32, i32
  }
}

module attributes {stable_mosaic.version = 11 : i64} {
  func.func @_pconv_kernel(%arg0: i32, %arg1: i32, %arg2: memref<1x16x128xbf16, #tpu.memory_space<vmem>>, %arg3: memref<16x16xbf16, #tpu.memory_space<vmem>>, %arg4: memref<16x1xf32, #tpu.memory_space<vmem>>, %arg5: memref<1x16x128xf32, #tpu.memory_space<vmem>>) attributes {dimension_semantics = [#tpu.dimension_semantics<parallel>, #tpu.dimension_semantics<parallel>], iteration_bounds = array<i64: 2, 1>, scalar_prefetch = 0 : i64, scratch_operands = 0 : i64, tpu.core_type = #tpu.core_type<tc>, window_params = [{transform_indices = @transform_0, window_bounds = array<i64: 1, 16, 128>}, {pipeline_mode = #tpu.pipeline_mode<synchronous>, transform_indices = @transform_1, window_bounds = array<i64: 16, 16>}, {pipeline_mode = #tpu.pipeline_mode<synchronous>, transform_indices = @transform_2, window_bounds = array<i64: 16, 1>}, {transform_indices = @transform_3, window_bounds = array<i64: 1, 16, 128>}]} {
    %c0 = arith.constant 0 : index
    %c0_0 = arith.constant 0 : index
    %0 = vector.load %arg3[%c0, %c0_0] : memref<16x16xbf16, #tpu.memory_space<vmem>>, vector<16x16xbf16>
    %c0_1 = arith.constant 0 : index
    %c0_2 = arith.constant 0 : index
    %c0_3 = arith.constant 0 : index
    %1 = vector.load %arg2[%c0_1, %c0_2, %c0_3] : memref<1x16x128xbf16, #tpu.memory_space<vmem>>, vector<1x16x128xbf16>
    %2 = vector.shape_cast %1 : vector<1x16x128xbf16> to vector<16x128xbf16>
    %cst = arith.constant dense<0.000000e+00> : vector<16x128xf32>
    %3 = tpu.matmul %0, %2, %cst {dimension_numbers = #tpu.dot_dimension_numbers<[1], [0], [0], [1], [0, 0, 1, 1], [], []>} : vector<16x16xbf16>, vector<16x128xbf16>, vector<16x128xf32> -> vector<16x128xf32>
    %c0_4 = arith.constant 0 : index
    %c0_5 = arith.constant 0 : index
    %4 = vector.load %arg4[%c0_4, %c0_5] : memref<16x1xf32, #tpu.memory_space<vmem>>, vector<16x1xf32>
    %5 = vector.broadcast %4 : vector<16x1xf32> to vector<16x128xf32>
    %6 = arith.addf %3, %5 : vector<16x128xf32>
    %c0_6 = arith.constant 0 : index
    %c0_7 = arith.constant 0 : index
    %c0_8 = arith.constant 0 : index
    %7 = vector.load %arg5[%c0_6, %c0_7, %c0_8] : memref<1x16x128xf32, #tpu.memory_space<vmem>>, vector<1x16x128xf32>
    %8 = vector.shape_cast %7 : vector<1x16x128xf32> to vector<16x128xf32>
    %9 = vector.shape_cast %6 : vector<16x128xf32> to vector<1x16x128xf32>
    tpu.vector_store %arg5[%c0_6, %c0_7, %c0_8], %9 {strides = array<i32>} : memref<1x16x128xf32, #tpu.memory_space<vmem>>, vector<1x16x128xf32>,
    return
  }
  func.func @transform_0(%arg0: i32, %arg1: i32) -> (i32, i32, i32) {
    %c0_i32 = arith.constant 0 : i32
    %c0_i32_0 = arith.constant 0 : i32
    return %arg0, %c0_i32, %arg1 : i32, i32, i32
  }
  func.func @transform_1(%arg0: i32, %arg1: i32) -> (i32, i32) {
    %c0_i32 = arith.constant 0 : i32
    %c0_i32_0 = arith.constant 0 : i32
    %c0_i32_1 = arith.constant 0 : i32
    return %c0_i32, %c0_i32_0 : i32, i32
  }
  func.func @transform_2(%arg0: i32, %arg1: i32) -> (i32, i32) {
    %c0_i32 = arith.constant 0 : i32
    %c0_i32_0 = arith.constant 0 : i32
    %c0_i32_1 = arith.constant 0 : i32
    return %c0_i32, %c0_i32_0 : i32, i32
  }
  func.func @transform_3(%arg0: i32, %arg1: i32) -> (i32, i32, i32) {
    %c0_i32 = arith.constant 0 : i32
    %c0_i32_0 = arith.constant 0 : i32
    return %arg0, %c0_i32, %arg1 : i32, i32, i32
  }
}

module attributes {stable_mosaic.version = 11 : i64} {
  func.func @_pconv_kernel(%arg0: i32, %arg1: i32, %arg2: memref<1x33x128xbf16, #tpu.memory_space<vmem>>, %arg3: memref<16x33xbf16, #tpu.memory_space<vmem>>, %arg4: memref<16x1xf32, #tpu.memory_space<vmem>>, %arg5: memref<1x16x128xf32, #tpu.memory_space<vmem>>) attributes {dimension_semantics = [#tpu.dimension_semantics<parallel>, #tpu.dimension_semantics<parallel>], iteration_bounds = array<i64: 2, 1>, scalar_prefetch = 0 : i64, scratch_operands = 0 : i64, tpu.core_type = #tpu.core_type<tc>, window_params = [{transform_indices = @transform_0, window_bounds = array<i64: 1, 33, 128>}, {pipeline_mode = #tpu.pipeline_mode<synchronous>, transform_indices = @transform_1, window_bounds = array<i64: 16, 33>}, {pipeline_mode = #tpu.pipeline_mode<synchronous>, transform_indices = @transform_2, window_bounds = array<i64: 16, 1>}, {transform_indices = @transform_3, window_bounds = array<i64: 1, 16, 128>}]} {
    %c0 = arith.constant 0 : index
    %c0_0 = arith.constant 0 : index
    %0 = vector.load %arg3[%c0, %c0_0] : memref<16x33xbf16, #tpu.memory_space<vmem>>, vector<16x33xbf16>
    %c0_1 = arith.constant 0 : index
    %c0_2 = arith.constant 0 : index
    %c0_3 = arith.constant 0 : index
    %1 = vector.load %arg2[%c0_1, %c0_2, %c0_3] : memref<1x33x128xbf16, #tpu.memory_space<vmem>>, vector<1x33x128xbf16>
    %2 = vector.shape_cast %1 : vector<1x33x128xbf16> to vector<33x128xbf16>
    %cst = arith.constant dense<0.000000e+00> : vector<16x128xf32>
    %3 = tpu.matmul %0, %2, %cst {dimension_numbers = #tpu.dot_dimension_numbers<[1], [0], [0], [1], [0, 0, 1, 1], [], []>} : vector<16x33xbf16>, vector<33x128xbf16>, vector<16x128xf32> -> vector<16x128xf32>
    %c0_4 = arith.constant 0 : index
    %c0_5 = arith.constant 0 : index
    %4 = vector.load %arg4[%c0_4, %c0_5] : memref<16x1xf32, #tpu.memory_space<vmem>>, vector<16x1xf32>
    %5 = vector.broadcast %4 : vector<16x1xf32> to vector<16x128xf32>
    %6 = arith.addf %3, %5 : vector<16x128xf32>
    %c0_6 = arith.constant 0 : index
    %c0_7 = arith.constant 0 : index
    %c0_8 = arith.constant 0 : index
    %7 = vector.load %arg5[%c0_6, %c0_7, %c0_8] : memref<1x16x128xf32, #tpu.memory_space<vmem>>, vector<1x16x128xf32>
    %8 = vector.shape_cast %7 : vector<1x16x128xf32> to vector<16x128xf32>
    %9 = vector.shape_cast %6 : vector<16x128xf32> to vector<1x16x128xf32>
    tpu.vector_store %arg5[%c0_6, %c0_7, %c0_8], %9 {strides = array<i32>} : memref<1x16x128xf32, #tpu.memory_space<vmem>>, vector<1x16x128xf32>,
    return
  }
  func.func @transform_0(%arg0: i32, %arg1: i32) -> (i32, i32, i32) {
    %c0_i32 = arith.constant 0 : i32
    %c0_i32_0 = arith.constant 0 : i32
    return %arg0, %c0_i32, %arg1 : i32, i32, i32
  }
  func.func @transform_1(%arg0: i32, %arg1: i32) -> (i32, i32) {
    %c0_i32 = arith.constant 0 : i32
    %c0_i32_0 = arith.constant 0 : i32
    %c0_i32_1 = arith.constant 0 : i32
    return %c0_i32, %c0_i32_0 : i32, i32
  }
  func.func @transform_2(%arg0: i32, %arg1: i32) -> (i32, i32) {
    %c0_i32 = arith.constant 0 : i32
    %c0_i32_0 = arith.constant 0 : i32
    %c0_i32_1 = arith.constant 0 : i32
    return %c0_i32, %c0_i32_0 : i32, i32
  }
  func.func @transform_3(%arg0: i32, %arg1: i32) -> (i32, i32, i32) {
    %c0_i32 = arith.constant 0 : i32
    %c0_i32_0 = arith.constant 0 : i32
    return %arg0, %c0_i32, %arg1 : i32, i32, i32
  }
}

module attributes {stable_mosaic.version = 11 : i64} {
  func.func @_pconv_kernel(%arg0: i32, %arg1: i32, %arg2: memref<1x16x128xbf16, #tpu.memory_space<vmem>>, %arg3: memref<3x16xbf16, #tpu.memory_space<vmem>>, %arg4: memref<3x1xf32, #tpu.memory_space<vmem>>, %arg5: memref<1x3x128xf32, #tpu.memory_space<vmem>>) attributes {dimension_semantics = [#tpu.dimension_semantics<parallel>, #tpu.dimension_semantics<parallel>], iteration_bounds = array<i64: 2, 1>, scalar_prefetch = 0 : i64, scratch_operands = 0 : i64, tpu.core_type = #tpu.core_type<tc>, window_params = [{transform_indices = @transform_0, window_bounds = array<i64: 1, 16, 128>}, {pipeline_mode = #tpu.pipeline_mode<synchronous>, transform_indices = @transform_1, window_bounds = array<i64: 3, 16>}, {pipeline_mode = #tpu.pipeline_mode<synchronous>, transform_indices = @transform_2, window_bounds = array<i64: 3, 1>}, {transform_indices = @transform_3, window_bounds = array<i64: 1, 3, 128>}]} {
    %c0 = arith.constant 0 : index
    %c0_0 = arith.constant 0 : index
    %0 = vector.load %arg3[%c0, %c0_0] : memref<3x16xbf16, #tpu.memory_space<vmem>>, vector<3x16xbf16>
    %c0_1 = arith.constant 0 : index
    %c0_2 = arith.constant 0 : index
    %c0_3 = arith.constant 0 : index
    %1 = vector.load %arg2[%c0_1, %c0_2, %c0_3] : memref<1x16x128xbf16, #tpu.memory_space<vmem>>, vector<1x16x128xbf16>
    %2 = vector.shape_cast %1 : vector<1x16x128xbf16> to vector<16x128xbf16>
    %cst = arith.constant dense<0.000000e+00> : vector<3x128xf32>
    %3 = tpu.matmul %0, %2, %cst {dimension_numbers = #tpu.dot_dimension_numbers<[1], [0], [0], [1], [0, 0, 1, 1], [], []>} : vector<3x16xbf16>, vector<16x128xbf16>, vector<3x128xf32> -> vector<3x128xf32>
    %c0_4 = arith.constant 0 : index
    %c0_5 = arith.constant 0 : index
    %4 = vector.load %arg4[%c0_4, %c0_5] : memref<3x1xf32, #tpu.memory_space<vmem>>, vector<3x1xf32>
    %5 = vector.broadcast %4 : vector<3x1xf32> to vector<3x128xf32>
    %6 = arith.addf %3, %5 : vector<3x128xf32>
    %c0_6 = arith.constant 0 : index
    %c0_7 = arith.constant 0 : index
    %c0_8 = arith.constant 0 : index
    %7 = vector.load %arg5[%c0_6, %c0_7, %c0_8] : memref<1x3x128xf32, #tpu.memory_space<vmem>>, vector<1x3x128xf32>
    %8 = vector.shape_cast %7 : vector<1x3x128xf32> to vector<3x128xf32>
    %9 = vector.shape_cast %6 : vector<3x128xf32> to vector<1x3x128xf32>
    tpu.vector_store %arg5[%c0_6, %c0_7, %c0_8], %9 {strides = array<i32>} : memref<1x3x128xf32, #tpu.memory_space<vmem>>, vector<1x3x128xf32>,
    return
  }
  func.func @transform_0(%arg0: i32, %arg1: i32) -> (i32, i32, i32) {
    %c0_i32 = arith.constant 0 : i32
    %c0_i32_0 = arith.constant 0 : i32
    return %arg0, %c0_i32, %arg1 : i32, i32, i32
  }
  func.func @transform_1(%arg0: i32, %arg1: i32) -> (i32, i32) {
    %c0_i32 = arith.constant 0 : i32
    %c0_i32_0 = arith.constant 0 : i32
    %c0_i32_1 = arith.constant 0 : i32
    return %c0_i32, %c0_i32_0 : i32, i32
  }
  func.func @transform_2(%arg0: i32, %arg1: i32) -> (i32, i32) {
    %c0_i32 = arith.constant 0 : i32
    %c0_i32_0 = arith.constant 0 : i32
    %c0_i32_1 = arith.constant 0 : i32
    return %c0_i32, %c0_i32_0 : i32, i32
  }
  func.func @transform_3(%arg0: i32, %arg1: i32) -> (i32, i32, i32) {
    %c0_i32 = arith.constant 0 : i32
    %c0_i32_0 = arith.constant 0 : i32
    return %arg0, %c0_i32, %arg1 : i32, i32, i32
  }
}

</mosaic_0001>

<bundles_post_ra>
// kernel: colorization_forward.14
= control target key start
LH: loop header
LB: loop body
LE: loop exit
PB: predicated region body
PF: predicated region fallthrough
CT: control target
= control target key end

     0   :  { %s507_s12 = smov 0   ;;  %s509_s13 = smov 0   ;;  %s560_s0 = inlined_call_operand.vmem [shape: bf16[2,32,128], index: 0, kind: input, shape index: {}]   ;;  %s561_s1 = inlined_call_operand.vmem [shape: bf16[32,32], index: 1, kind: input, shape index: {}]   ;;  %s562_s2 = inlined_call_operand.vmem [shape: f32[32,1], index: 2, kind: input, shape index: {}]   ;;  %s563_s3 = inlined_call_operand.vmem [shape: f32[2,32,128], index: 3, kind: output, shape index: {}]  }
   0x1   :  { %s511_s14 = smov 0  }
   0x2 LB: > { %s25_s15 = sadd.s32 1, %s480_s13  ;;  %p404_p0 = scmp.ge.s32.totalorder %s484_s14, 1  ;;  %s484_s14 = sphi %s511_s14, %s13_s14   ;;  %s480_s13 = sphi %s509_s13, %s565_s13   ;;  %s476_s12 = sphi %s507_s12, %s564_s12  }
   0x3   : > { %p27_p1 = scmp.ge.s32.totalorder %s25_s15, 2  ;;  %p156_p2 = scmp.lt.s32.totalorder %s484_s14, 3 }
   0x5   : > { %s567_s15 = smov (%p27_p1, %s25_s15), 0  ;;  %p157_p3 = pnand %p404_p0, %p156_p2 }
   0x6   : > { %p186_p4 = scmp.lt.s32.totalorder (!%p157_p3), %s476_s12, 1  ;;  %v460_v0 = vld [vmem:[%s561_s1] sm:$0xff] (!%p157_p3)   ;;  %vm257_vm0 = vcmask (!%p157_p3), 261120   ;;  %v213_v1 = vld [vmem:[%s562_s2 + $0x10] sm:$0xff] (!%p157_p3)  ;;  %v486_v3 = vmov (!%p157_p3), 0   ;;  %v214_v4 = vld [vmem:[%s562_s2 + $0x18] sm:$0xff] (!%p157_p3) }
   0x7   : > { %160 = sbr.rel (%p157_p3) target bundleno = 244 (0xf4), region = 32  ;;  %427 = vmatprep.mubr.msk.bf16.mxu0 (!%p157_p3), %vm257_vm0, %v460_v0  ;;  %v211_v2 = vld [vmem:[%s562_s2] sm:$0xff] (!%p157_p3)  ;;  %457 = vset.pattern.permute.xlu1 (!%p157_p3), %v486_v3  ;;  %v212_v5 = vld [vmem:[%s562_s2 + $0x8] sm:$0xff] (!%p157_p3) }
   0x8   : > { %456 = vset.pattern.permute.xlu0 (!%p157_p3), %v486_v3  ;;  %227 = vperm.xlu1 (!%p157_p3), %457, %v213_v1   ;;  %v461_v8 = vld [vmem:[%s561_s1 + $0x8] sm:$0xff] (!%p157_p3)  }
   0x9   : > { %217 = vperm.xlu0 (!%p157_p3), %456, %v211_v2  }
   0xc   : > { %232 = vperm.xlu1 (!%p157_p3), %457, %v214_v4  }
   0xd   : > { %222 = vperm.xlu0 (!%p157_p3), %456, %v212_v5  }
   0xe   : > { %s569_s12 = smov (!%p186_p4, %s476_s12), 1 }
   0xf   : > { %s417_s22 = sshll.u32 %s569_s12, 4  ;;  %s418_s5 = sshll.u32 %s569_s12, 5 }
  0x10   : > { %s193_s25 = scalar_lea.vmem %s560_s0, %s417_s22  ;;  %s201_s8 = scalar_lea.vmem %s563_s3, %s418_s5 }
  0x11   : > { %v458_v6 = vld [vmem:[%s193_s25] sm:$0xff]   ;;  %v459_v7 = vld [vmem:[%s193_s25 + $0x8] sm:$0xff]  }
  0x12   : > { %423 = vmatprep.subr.bf16.mxu0 %v458_v6 }
  0x13   : > { %424 = vmatpush3.bf16.msra.mxu0 %v458_v6 }
  0x14   : > { %425 = vmatprep.subr.bf16.mxu0 %v459_v7 }
  0x17   : > { %426 = vmatpush3.bf16.msra.mxu0 %v459_v7 }
  0x1a   : > { %428 = vmatmul.mubr.msk.bf16.vlgmr.msra.gmra.mrb[0].mxu0 %vm257_vm0, %v461_v8 }
  0x87   : > { %v228_v9 = vpop.permute.xlu1 %227 }
  0x88   : > { %v218_v10 = vpop.permute.xlu0 %217 }
  0x8b   : > { %v233_v14 = vpop.permute.xlu1 %232 }
  0x8c   : > { %v223_v17 = vpop.permute.xlu0 %222 }
  0xed   : > { %v429_v11 = vpop.f32.mrb[0].mxu0 }
  0xee   : > { %v307_v12 = vadd.f32 %v429_v11, %v228_v9  ;;  %v298_v13 = vpop.f32.mrb[1].mxu0 }
  0xef   : > { %v299_v15 = vadd.f32 %v298_v13, %v218_v10  ;;  %v430_v16 = vpop.f32.mrb[2].mxu0 }
  0xf0   : > { %315 = vst [vmem:[%s201_s8 + $0x10] sm:$0xff] %v307_v12  ;;  %v310_v18 = vadd.f32 %v430_v16, %v233_v14  ;;  %v301_v19 = vpop.f32.mrb[3].mxu0 }
  0xf1   : > { %313 = vst [vmem:[%s201_s8] sm:$0xff] %v299_v15  ;;  %v302_v20 = vadd.f32 %v301_v19, %v223_v17 }
  0xf2   : > { %316 = vst [vmem:[%s201_s8 + $0x18] sm:$0xff] %v310_v18 }
  0xf3   : > { %314 = vst [vmem:[%s201_s8 + $0x8] sm:$0xff] %v302_v20 }
  0xf4 PF: > { %s13_s14 = sadd.s32 1, %s484_s14   ;;  %s564_s12 = smov %s480_s13 }
  0xf5   : > { %p10_p5 = scmp.ge.s32.totalorder %s13_s14, 4   ;;  %s565_s13 = smov %s567_s15 }
  0xf7   :  { %12 = sbr.rel (!%p10_p5) target bundleno = 2 (0x2), region = 62 }

// kernel: colorization_forward.16
= control target key start
LH: loop header
LB: loop body
LE: loop exit
PB: predicated region body
PF: predicated region fallthrough
CT: control target
= control target key end

     0   :  { %s474_s12 = smov 0   ;;  %s476_s13 = smov 0   ;;  %s516_s0 = inlined_call_operand.vmem [shape: bf16[2,32,128], index: 0, kind: input, shape index: {}]   ;;  %s517_s1 = inlined_call_operand.vmem [shape: bf16[16,32], index: 1, kind: input, shape index: {}]   ;;  %s518_s2 = inlined_call_operand.vmem [shape: f32[16,1], index: 2, kind: input, shape index: {}]   ;;  %s519_s3 = inlined_call_operand.vmem [shape: f32[2,16,128], index: 3, kind: output, shape index: {}]  }
   0x1   :  { %s478_s14 = smov 0  }
   0x2 LB: > { %s25_s15 = sadd.s32 1, %s445_s13  ;;  %p372_p0 = scmp.ge.s32.totalorder %s449_s14, 1  ;;  %s449_s14 = sphi %s478_s14, %s13_s14   ;;  %s445_s13 = sphi %s476_s13, %s521_s13   ;;  %s441_s12 = sphi %s474_s12, %s520_s12  }
   0x3   : > { %p27_p1 = scmp.ge.s32.totalorder %s25_s15, 2  ;;  %p156_p2 = scmp.lt.s32.totalorder %s449_s14, 3 }
   0x5   : > { %s523_s15 = smov (%p27_p1, %s25_s15), 0  ;;  %p157_p3 = pnand %p372_p0, %p156_p2 }
   0x6   : > { %p186_p4 = scmp.lt.s32.totalorder (!%p157_p3), %s441_s12, 1  ;;  %v451_v0 = vmov (!%p157_p3), 0.0   ;;  %vm452_vm0 = vmmov (!%p157_p3), 0   ;;  %v209_v1 = vld [vmem:[%s518_s2] sm:$0xff] (!%p157_p3)  ;;  %v453_v2 = vmov (!%p157_p3), 0   ;;  %v210_v3 = vld [vmem:[%s518_s2 + $0x8] sm:$0xff] (!%p157_p3) }
   0x7   : > { %160 = sbr.rel (%p157_p3) target bundleno = 242 (0xf2), region = 32  ;;  %388 = vmatprep.subr.bf16.mxu0 (!%p157_p3), %v451_v0  ;;  %392 = vmatprep.mubr.msk.bf16.mxu0 (!%p157_p3), %vm452_vm0, %v451_v0  ;;  %v426_v6 = vld [vmem:[%s517_s1] sm:$0xff] (!%p157_p3)   ;;  %vm238_vm1 = vcmask (!%p157_p3), 261120  }
   0x8   : > { %423 = vset.pattern.permute.xlu0 (!%p157_p3), %v453_v2 }
   0x9   : > { %213 = vperm.xlu0 (!%p157_p3), %423, %v209_v1  }
   0xd   : > { %218 = vperm.xlu0 (!%p157_p3), %423, %v210_v3  }
   0xe   : > { %s525_s12 = smov (!%p186_p4, %s441_s12), 1 }
   0xf   : > { %s383_s18 = sshll.u32 %s525_s12, 4 }
  0x10   : > { %s193_s23 = scalar_lea.vmem %s516_s0, %s383_s18  ;;  %s201_s28 = scalar_lea.vmem %s519_s3, %s383_s18 }
  0x11   : > { %v424_v4 = vld [vmem:[%s193_s23] sm:$0xff]   ;;  %v425_v5 = vld [vmem:[%s193_s23 + $0x8] sm:$0xff]  }
  0x12   : > { %389 = vmatpush3.bf16.msra.mxu0 %v424_v4 }
  0x13   : > { %390 = vmatprep.subr.bf16.mxu0 %v451_v0 }
  0x16   : > { %391 = vmatpush3.bf16.msra.mxu0 %v425_v5 }
  0x19   : > { %393 = vmatmul.mubr.msk.bf16.vlgmr.msra.gmra.mrb[0].mxu0 %vm238_vm1, %v426_v6 }
  0x88   : > { %v214_v7 = vpop.permute.xlu0 %213 }
  0x8c   : > { %v219_v11 = vpop.permute.xlu0 %218 }
  0xec   : > { %v276_v8 = vpop.f32.mrb[0].mxu0 }
  0xed   : > { %v277_v9 = vadd.f32 %v276_v8, %v214_v7  ;;  %v394_v10 = vpop.f32.mrb[1].mxu0 }
  0xee   : > { %v279_v12 = vpop.f32.mrb[2].mxu0 }
  0xef   : > { %283 = vst [vmem:[%s201_s28] sm:$0xff] %v277_v9  ;;  %v280_v13 = vadd.f32 %v279_v12, %v219_v11  ;;  %v395_v14 = vpop.f32.mrb[3].mxu0 }
  0xf1   : > { %284 = vst [vmem:[%s201_s28 + $0x8] sm:$0xff] %v280_v13 }
  0xf2 PF: > { %s13_s14 = sadd.s32 1, %s449_s14   ;;  %s520_s12 = smov %s445_s13 }
  0xf3   : > { %p10_p5 = scmp.ge.s32.totalorder %s13_s14, 4   ;;  %s521_s13 = smov %s523_s15 }
  0xf5   :  { %12 = sbr.rel (!%p10_p5) target bundleno = 2 (0x2), region = 62 }

// kernel: colorization_forward.18
= control target key start
LH: loop header
LB: loop body
LE: loop exit
PB: predicated region body
PF: predicated region fallthrough
CT: control target
= control target key end

     0   :  { %s461_s12 = smov 0   ;;  %s463_s13 = smov 0   ;;  %s503_s0 = inlined_call_operand.vmem [shape: bf16[2,16,128], index: 0, kind: input, shape index: {}]   ;;  %s504_s1 = inlined_call_operand.vmem [shape: bf16[16,16], index: 1, kind: input, shape index: {}]   ;;  %s505_s2 = inlined_call_operand.vmem [shape: f32[16,1], index: 2, kind: input, shape index: {}]   ;;  %s506_s3 = inlined_call_operand.vmem [shape: f32[2,16,128], index: 3, kind: output, shape index: {}]  }
   0x1   :  { %s465_s14 = smov 0  }
   0x2 LB: > { %s25_s15 = sadd.s32 1, %s432_s13  ;;  %p364_p0 = scmp.ge.s32.totalorder %s436_s14, 1  ;;  %s436_s14 = sphi %s465_s14, %s13_s14   ;;  %s432_s13 = sphi %s463_s13, %s508_s13   ;;  %s428_s12 = sphi %s461_s12, %s507_s12  }
   0x3   : > { %p27_p1 = scmp.ge.s32.totalorder %s25_s15, 2  ;;  %p156_p2 = scmp.lt.s32.totalorder %s436_s14, 3 }
   0x5   : > { %s510_s15 = smov (%p27_p1, %s25_s15), 0  ;;  %p157_p3 = pnand %p364_p0, %p156_p2 }
   0x6   : > { %p186_p4 = scmp.lt.s32.totalorder (!%p157_p3), %s428_s12, 1  ;;  %v438_v0 = vmov (!%p157_p3), 0.0   ;;  %vm439_vm0 = vmmov (!%p157_p3), 0   ;;  %v207_v1 = vld [vmem:[%s505_s2] sm:$0xff] (!%p157_p3)  ;;  %v440_v2 = vmov (!%p157_p3), 0   ;;  %v208_v3 = vld [vmem:[%s505_s2 + $0x8] sm:$0xff] (!%p157_p3) }
   0x7   : > { %160 = sbr.rel (%p157_p3) target bundleno = 238 (0xee), region = 32  ;;  %378 = vmatprep.subr.bf16.mxu0 (!%p157_p3), %v438_v0  ;;  %380 = vmatprep.mubr.msk.bf16.mxu0 (!%p157_p3), %vm439_vm0, %v438_v0  ;;  %v413_v5 = vld [vmem:[%s504_s1] sm:$0xff] (!%p157_p3)   ;;  %vm230_vm1 = vcmask (!%p157_p3), 130048  }
   0x8   : > { %411 = vset.pattern.permute.xlu0 (!%p157_p3), %v440_v2 }
   0x9   : > { %211 = vperm.xlu0 (!%p157_p3), %411, %v207_v1  }
   0xd   : > { %216 = vperm.xlu0 (!%p157_p3), %411, %v208_v3  }
   0xe   : > { %s512_s12 = smov (!%p186_p4, %s428_s12), 1 }
   0xf   : > { %s374_s18 = sshll.u32 %s512_s12, 3  ;;  %s375_s26 = sshll.u32 %s512_s12, 4 }
  0x10   : > { %s193_s23 = scalar_lea.vmem %s503_s0, %s374_s18  ;;  %s201_s29 = scalar_lea.vmem %s506_s3, %s375_s26 }
  0x11   : > { %v412_v4 = vld [vmem:[%s193_s23] sm:$0xff]  }
  0x12   : > { %379 = vmatpush3.bf16.msra.mxu0 %v412_v4 }
  0x15   : > { %381 = vmatmul.mubr.msk.bf16.vlgmr.msra.gmra.mrb[0].mxu0 %vm230_vm1, %v413_v5 }
  0x88   : > { %v212_v6 = vpop.permute.xlu0 %211 }
  0x8c   : > { %v217_v10 = vpop.permute.xlu0 %216 }
  0xe8   : > { %v268_v7 = vpop.f32.mrb[0].mxu0 }
  0xe9   : > { %v269_v8 = vadd.f32 %v268_v7, %v212_v6  ;;  %v382_v9 = vpop.f32.mrb[1].mxu0 }
  0xea   : > { %v271_v11 = vpop.f32.mrb[2].mxu0 }
  0xeb   : > { %275 = vst [vmem:[%s201_s29] sm:$0xff] %v269_v8  ;;  %v272_v12 = vadd.f32 %v271_v11, %v217_v10  ;;  %v383_v13 = vpop.f32.mrb[3].mxu0 }
  0xed   : > { %276 = vst [vmem:[%s201_s29 + $0x8] sm:$0xff] %v272_v12 }
  0xee PF: > { %s13_s14 = sadd.s32 1, %s436_s14   ;;  %s507_s12 = smov %s432_s13 }
  0xef   : > { %p10_p5 = scmp.ge.s32.totalorder %s13_s14, 4   ;;  %s508_s13 = smov %s510_s15 }
  0xf1   :  { %12 = sbr.rel (!%p10_p5) target bundleno = 2 (0x2), region = 62 }

// kernel: colorization_forward.17
= control target key start
LH: loop header
LB: loop body
LE: loop exit
PB: predicated region body
PF: predicated region fallthrough
CT: control target
= control target key end

     0   :  { %vm49_vm0 = vcmask 261120   ;;  %v2127_v0 = vmov 0.0   ;;  %vm2128_vm1 = vmmov 0   ;;  %vm786_vm2 = vcmask 64512   ;;  %s2788_s1 = inlined_call_operand.vmem [shape: bf16[16,8,32], index: 1, kind: input, shape index: {}]   ;;  %s2789_s0 = inlined_call_operand.vmem [shape: bf16[16,8,32], index: 0, kind: input, shape index: {}]   ;;  %s2790_s2 = inlined_call_operand.vmem [shape: bf16[16,8,16], index: 2, kind: input, shape index: {}]   ;;  %s2791_s3 = inlined_call_operand.vmem [shape: f32[16,8,8], index: 3, kind: output, shape index: {0}]   ;;  %s2792_s4 = inlined_call_operand.vmem [shape: f32[16,8,16], index: 4, kind: output, shape index: {1}]  }
   0x1   :  { %1869 = vmatprep.subr.bf16.mxu0 %v2127_v0  ;;  %1875 = vmatprep.subr.bf16.mxu1 %v2127_v0  ;;  %v33_v1 = vld [vmem:[%s2788_s1] sm:$0xf]  ;;  %v34_v2 = vld [vmem:[%s2788_s1 + $0x4] sm:$0xf]  ;;  %v35_v5 = vld [vmem:[%s2788_s1 + $0x8] sm:$0xf] }
   0x2   :  { %v54_v3 = vsel %vm49_vm0, %v33_v1, 0  ;;  %v100_v4 = vsel %vm49_vm0, %v34_v2, 0  ;;  %1871 = vmatprep.mubr.msk.bf16.mxu0 %vm2128_vm1, %v2127_v0  ;;  %1877 = vmatprep.mubr.msk.bf16.mxu1 %vm2128_vm1, %v2127_v0  ;;  %v36_v6 = vld [vmem:[%s2788_s1 + $0xc] sm:$0xf]  ;;  %v17_v7 = vld [vmem:[%s2789_s0] sm:$0xf] }
   0x3   :  { %1870 = vmatpush3.bf16.xpose.msra.mxu0 %v54_v3  ;;  %1876 = vmatpush3.bf16.xpose.msra.mxu1 %v100_v4  ;;  %v18_v8 = vld [vmem:[%s2789_s0 + $0x4] sm:$0xf]  ;;  %v146_v9 = vsel %vm49_vm0, %v35_v5, 0  ;;  %v192_v10 = vsel %vm49_vm0, %v36_v6, 0  ;;  %v37_v11 = vld [vmem:[%s2788_s1 + $0x10] sm:$0xf] }
   0x4   :  { %1881 = vmatprep.subr.bf16.mxu0 %v2127_v0  ;;  %1887 = vmatprep.subr.bf16.mxu1 %v2127_v0  ;;  %v38_v12 = vld [vmem:[%s2788_s1 + $0x14] sm:$0xf]  ;;  %v19_v13 = vld [vmem:[%s2789_s0 + $0x8] sm:$0xf]  ;;  %v20_v14 = vld [vmem:[%s2789_s0 + $0xc] sm:$0xf] }
   0x5   :  { %v238_v15 = vsel %vm49_vm0, %v37_v11, 0  ;;  %v284_v16 = vsel %vm49_vm0, %v38_v12, 0  ;;  %v39_v17 = vld [vmem:[%s2788_s1 + $0x18] sm:$0xf]  ;;  %v40_v18 = vld [vmem:[%s2788_s1 + $0x1c] sm:$0xf] }
   0x6   :  { %v21_v19 = vld [vmem:[%s2789_s0 + $0x10] sm:$0xf]  ;;  %v22_v20 = vld [vmem:[%s2789_s0 + $0x14] sm:$0xf]  ;;  %v330_v21 = vsel %vm49_vm0, %v39_v17, 0  ;;  %v376_v22 = vsel %vm49_vm0, %v40_v18, 0 }
   0x7   :  { %v41_v23 = vld [vmem:[%s2788_s1 + $0x20] sm:$0xf]  ;;  %v42_v24 = vld [vmem:[%s2788_s1 + $0x24] sm:$0xf]  ;;  %v23_v25 = vld [vmem:[%s2789_s0 + $0x18] sm:$0xf] }
   0x8   :  { %v24_v26 = vld [vmem:[%s2789_s0 + $0x1c] sm:$0xf]  ;;  %v422_v27 = vsel %vm49_vm0, %v41_v23, 0  ;;  %v468_v28 = vsel %vm49_vm0, %v42_v24, 0  ;;  %v43_v29 = vld [vmem:[%s2788_s1 + $0x28] sm:$0xf] }
   0x9   :  { %v44_v30 = vld [vmem:[%s2788_s1 + $0x2c] sm:$0xf]  ;;  %v25_v31 = vld [vmem:[%s2789_s0 + $0x20] sm:$0xf]  ;;  %v26_v32 = vld [vmem:[%s2789_s0 + $0x24] sm:$0xf] }
   0xa   :  { %1872 = vmatmul.mubr.msk.bf16.vlgmr.msra.gmra.mrb[0].mxu0 %vm49_vm0, %v17_v7  ;;  %1878 = vmatmul.mubr.msk.bf16.vlgmr.msra.gmra.mrb[0].mxu1 %vm49_vm0, %v18_v8  ;;  %v514_v33 = vsel %vm49_vm0, %v43_v29, 0  ;;  %v560_v34 = vsel %vm49_vm0, %v44_v30, 0  ;;  %v45_v35 = vld [vmem:[%s2788_s1 + $0x30] sm:$0xf]  ;;  %v46_v36 = vld [vmem:[%s2788_s1 + $0x34] sm:$0xf] }
   0xb   :  { %1882 = vmatpush3.bf16.xpose.msra.mxu0 %v146_v9  ;;  %1888 = vmatpush3.bf16.xpose.msra.mxu1 %v192_v10  ;;  %v27_v37 = vld [vmem:[%s2789_s0 + $0x28] sm:$0xf]  ;;  %v28_v38 = vld [vmem:[%s2789_s0 + $0x2c] sm:$0xf]  ;;  %v606_v39 = vsel %vm49_vm0, %v45_v35, 0  ;;  %v652_v40 = vsel %vm49_vm0, %v46_v36, 0 }
   0xc   :  { %1883 = vmatprep.mubr.msk.bf16.mxu0 %vm2128_vm1, %v2127_v0  ;;  %1889 = vmatprep.mubr.msk.bf16.mxu1 %vm2128_vm1, %v2127_v0  ;;  %v47_v41 = vld [vmem:[%s2788_s1 + $0x38] sm:$0xf]  ;;  %v48_v42 = vld [vmem:[%s2788_s1 + $0x3c] sm:$0xf]  ;;  %v29_v43 = vld [vmem:[%s2789_s0 + $0x30] sm:$0xf] }
   0xd   :  { %1893 = vmatprep.subr.bf16.mxu0 %v2127_v0  ;;  %1899 = vmatprep.subr.bf16.mxu1 %v2127_v0  ;;  %v30_v44 = vld [vmem:[%s2789_s0 + $0x34] sm:$0xf]  ;;  %v698_v45 = vsel %vm49_vm0, %v47_v41, 0  ;;  %v744_v46 = vsel %vm49_vm0, %v48_v42, 0  ;;  %v31_v47 = vld [vmem:[%s2789_s0 + $0x38] sm:$0xf] }
   0xe   :  { %v32_v48 = vld [vmem:[%s2789_s0 + $0x3c] sm:$0xf]  ;;  %vm1014_vm3 = vcmask 1043456   ;;  %vm1748_vm4 = vcmask 130048  }
  0x12   :  { %1884 = vmatmul.mubr.msk.bf16.vlgmr.msra.gmra.mrb[4].mxu0 %vm49_vm0, %v19_v13  ;;  %1890 = vmatmul.mubr.msk.bf16.vlgmr.msra.gmra.mrb[4].mxu1 %vm49_vm0, %v20_v14 }
  0x13   :  { %1894 = vmatpush3.bf16.xpose.msra.mxu0 %v238_v15  ;;  %1900 = vmatpush3.bf16.xpose.msra.mxu1 %v284_v16 }
  0x14   :  { %1895 = vmatprep.mubr.msk.bf16.mxu0 %vm2128_vm1, %v2127_v0  ;;  %1901 = vmatprep.mubr.msk.bf16.mxu1 %vm2128_vm1, %v2127_v0 }
  0x15   :  { %1905 = vmatprep.subr.bf16.mxu0 %v2127_v0  ;;  %1911 = vmatprep.subr.bf16.mxu1 %v2127_v0 }
  0x1a   :  { %1896 = vmatmul.mubr.msk.bf16.vlgmr.msra.gmra.mrb[8].mxu0 %vm49_vm0, %v21_v19  ;;  %1902 = vmatmul.mubr.msk.bf16.vlgmr.msra.gmra.mrb[8].mxu1 %vm49_vm0, %v22_v20 }
  0x1b   :  { %1906 = vmatpush3.bf16.xpose.msra.mxu0 %v330_v21  ;;  %1912 = vmatpush3.bf16.xpose.msra.mxu1 %v376_v22 }
  0x1c   :  { %1907 = vmatprep.mubr.msk.bf16.mxu0 %vm2128_vm1, %v2127_v0  ;;  %1913 = vmatprep.mubr.msk.bf16.mxu1 %vm2128_vm1, %v2127_v0 }
  0x1d   :  { %1917 = vmatprep.subr.bf16.mxu0 %v2127_v0  ;;  %1923 = vmatprep.subr.bf16.mxu1 %v2127_v0 }
  0x22   :  { %1908 = vmatmul.mubr.msk.bf16.vlgmr.msra.gmra.mrb[12].mxu0 %vm49_vm0, %v23_v25  ;;  %1914 = vmatmul.mubr.msk.bf16.vlgmr.msra.gmra.mrb[12].mxu1 %vm49_vm0, %v24_v26 }
  0x23   :  { %1918 = vmatpush3.bf16.xpose.msra.mxu0 %v422_v27  ;;  %1924 = vmatpush3.bf16.xpose.msra.mxu1 %v468_v28 }
  0x24   :  { %1919 = vmatprep.mubr.msk.bf16.mxu0 %vm2128_vm1, %v2127_v0  ;;  %1925 = vmatprep.mubr.msk.bf16.mxu1 %vm2128_vm1, %v2127_v0 }
  0x25   :  { %1929 = vmatprep.subr.bf16.mxu0 %v2127_v0  ;;  %1935 = vmatprep.subr.bf16.mxu1 %v2127_v0 }
  0x2a   :  { %1920 = vmatmul.mubr.msk.bf16.vlgmr.msra.gmra.mrb[16].mxu0 %vm49_vm0, %v25_v31  ;;  %1926 = vmatmul.mubr.msk.bf16.vlgmr.msra.gmra.mrb[16].mxu1 %vm49_vm0, %v26_v32 }
  0x2b   :  { %1930 = vmatpush3.bf16.xpose.msra.mxu0 %v514_v33  ;;  %1936 = vmatpush3.bf16.xpose.msra.mxu1 %v560_v34 }
  0x2c   :  { %1931 = vmatprep.mubr.msk.bf16.mxu0 %vm2128_vm1, %v2127_v0  ;;  %1937 = vmatprep.mubr.msk.bf16.mxu1 %vm2128_vm1, %v2127_v0 }
  0x2d   :  { %1941 = vmatprep.subr.bf16.mxu0 %v2127_v0  ;;  %1947 = vmatprep.subr.bf16.mxu1 %v2127_v0 }
  0x32   :  { %1932 = vmatmul.mubr.msk.bf16.vlgmr.msra.gmra.mrb[20].mxu0 %vm49_vm0, %v27_v37  ;;  %1938 = vmatmul.mubr.msk.bf16.vlgmr.msra.gmra.mrb[20].mxu1 %vm49_vm0, %v28_v38 }
  0x33   :  { %1942 = vmatpush3.bf16.xpose.msra.mxu0 %v606_v39  ;;  %1948 = vmatpush3.bf16.xpose.msra.mxu1 %v652_v40 }
  0x34   :  { %1943 = vmatprep.mubr.msk.bf16.mxu0 %vm2128_vm1, %v2127_v0  ;;  %1949 = vmatprep.mubr.msk.bf16.mxu1 %vm2128_vm1, %v2127_v0 }
  0x35   :  { %1953 = vmatprep.subr.bf16.mxu0 %v2127_v0  ;;  %1959 = vmatprep.subr.bf16.mxu1 %v2127_v0 }
  0x3a   :  { %1944 = vmatmul.mubr.msk.bf16.vlgmr.msra.gmra.mrb[24].mxu0 %vm49_vm0, %v29_v43  ;;  %1950 = vmatmul.mubr.msk.bf16.vlgmr.msra.gmra.mrb[24].mxu1 %vm49_vm0, %v30_v44 }
  0x3b   :  { %1954 = vmatpush3.bf16.xpose.msra.mxu0 %v698_v45  ;;  %1960 = vmatpush3.bf16.xpose.msra.mxu1 %v744_v46 }
  0x3c   :  { %1955 = vmatprep.mubr.msk.bf16.mxu0 %vm2128_vm1, %v2127_v0  ;;  %1961 = vmatprep.mubr.msk.bf16.mxu1 %vm2128_vm1, %v2127_v0 }
  0x3d   :  { %1965 = vmatprep.subr.bf16.mxu0 %v2127_v0  ;;  %1971 = vmatprep.subr.bf16.mxu1 %v2127_v0 }
  0x42   :  { %1956 = vmatmul.mubr.msk.bf16.vlgmr.msra.gmra.mrb[28].mxu0 %vm49_vm0, %v31_v47  ;;  %1962 = vmatmul.mubr.msk.bf16.vlgmr.msra.gmra.mrb[28].mxu1 %vm49_vm0, %v32_v48 }
  0x43   :  { %1967 = vmatprep.mubr.msk.bf16.mxu0 %vm2128_vm1, %v2127_v0  ;;  %1973 = vmatprep.mubr.msk.bf16.mxu1 %vm2128_vm1, %v2127_v0 }
  0xdd   :  { %v2336_v49 = vpop.f32.mrb[0].mxu0  ;;  %v2338_v50 = vpop.f32.mrb[0].mxu1 }
  0xde   :  { %v1873_v51 = vpop.f32.mrb[1].mxu0  ;;  %v787_v52 = vsel %vm786_vm2, %v2336_v49, -inf  ;;  %v1879_v53 = vpop.f32.mrb[1].mxu1  ;;  %v790_v58 = vsel %vm786_vm2, %v2338_v50, -inf }
  0xdf   :  { %788 = vmax.xlane.f32.xlu0 %v787_v52  ;;  %v93_v54 = vpop.f32.mrb[2].mxu0  ;;  %v139_v55 = vpop.f32.mrb[2].mxu1 }
  0xe0   :  { %v1874_v56 = vpop.f32.mrb[3].mxu0  ;;  %v1880_v57 = vpop.f32.mrb[3].mxu1 }
  0xe3   :  { %791 = vmax.xlane.f32.xlu0 %v790_v58 }
  0xe5   :  { %v2344_v59 = vpop.f32.mrb[4].mxu0  ;;  %v2346_v60 = vpop.f32.mrb[4].mxu1 }
  0xe6   :  { %v1885_v61 = vpop.f32.mrb[5].mxu0  ;;  %v793_v62 = vsel %vm786_vm2, %v2344_v59, -inf  ;;  %v1891_v63 = vpop.f32.mrb[5].mxu1  ;;  %v796_v5 = vsel %vm786_vm2, %v2346_v60, -inf }
  0xe7   :  { %794 = vmax.xlane.f32.xlu1 %v793_v62  ;;  %v185_v1 = vpop.f32.mrb[6].mxu0  ;;  %v231_v2 = vpop.f32.mrb[6].mxu1 }
  0xe8   :  { %v1886_v3 = vpop.f32.mrb[7].mxu0  ;;  %v1892_v4 = vpop.f32.mrb[7].mxu1 }
  0xeb   :  { %797 = vmax.xlane.f32.xlu1 %v796_v5 }
  0xed   :  { %v2352_v6 = vpop.f32.mrb[8].mxu0  ;;  %v2354_v7 = vpop.f32.mrb[8].mxu1 }
  0xee   :  { %v802_v8 = vsel %vm786_vm2, %v2354_v7, -inf  ;;  %v799_v9 = vsel %vm786_vm2, %v2352_v6, -inf  ;;  %v1897_v10 = vpop.f32.mrb[9].mxu0  ;;  %v1903_v11 = vpop.f32.mrb[9].mxu1 }
  0xef   :  { %803 = vmax.xlane.f32.xlu1 %v802_v8  ;;  %800 = vmax.xlane.f32.xlu0 %v799_v9  ;;  %v277_v12 = vpop.f32.mrb[10].mxu0  ;;  %v323_v13 = vpop.f32.mrb[10].mxu1 }
  0xf0   :  { %v1898_v14 = vpop.f32.mrb[11].mxu0  ;;  %v1904_v15 = vpop.f32.mrb[11].mxu1 }
  0xf5   :  { %v2360_v16 = vpop.f32.mrb[12].mxu0  ;;  %v2362_v17 = vpop.f32.mrb[12].mxu1 }
  0xf6   :  { %v808_v18 = vsel %vm786_vm2, %v2362_v17, -inf  ;;  %v805_v19 = vsel %vm786_vm2, %v2360_v16, -inf  ;;  %v1909_v20 = vpop.f32.mrb[13].mxu0  ;;  %v1915_v21 = vpop.f32.mrb[13].mxu1 }
  0xf7   :  { %809 = vmax.xlane.f32.xlu1 %v808_v18  ;;  %806 = vmax.xlane.f32.xlu0 %v805_v19  ;;  %v369_v22 = vpop.f32.mrb[14].mxu0  ;;  %v415_v23 = vpop.f32.mrb[14].mxu1 }
  0xf8   :  { %v1910_v24 = vpop.f32.mrb[15].mxu0  ;;  %v1916_v25 = vpop.f32.mrb[15].mxu1 }
  0xfd   :  { %v2368_v26 = vpop.f32.mrb[16].mxu0  ;;  %v2370_v27 = vpop.f32.mrb[16].mxu1 }
  0xfe   :  { %v814_v28 = vsel %vm786_vm2, %v2370_v27, -inf  ;;  %v811_v29 = vsel %vm786_vm2, %v2368_v26, -inf  ;;  %v1921_v30 = vpop.f32.mrb[17].mxu0  ;;  %v1927_v31 = vpop.f32.mrb[17].mxu1 }
  0xff   :  { %815 = vmax.xlane.f32.xlu1 %v814_v28  ;;  %812 = vmax.xlane.f32.xlu0 %v811_v29  ;;  %v461_v32 = vpop.f32.mrb[18].mxu0  ;;  %v507_v33 = vpop.f32.mrb[18].mxu1 }
 0x100   :  { %v1922_v34 = vpop.f32.mrb[19].mxu0  ;;  %v1928_v35 = vpop.f32.mrb[19].mxu1 }
 0x105   :  { %v2376_v36 = vpop.f32.mrb[20].mxu0  ;;  %v2378_v37 = vpop.f32.mrb[20].mxu1 }
 0x106   :  { %v820_v38 = vsel %vm786_vm2, %v2378_v37, -inf  ;;  %v817_v39 = vsel %vm786_vm2, %v2376_v36, -inf  ;;  %v1933_v40 = vpop.f32.mrb[21].mxu0  ;;  %v1939_v41 = vpop.f32.mrb[21].mxu1 }
 0x107   :  { %821 = vmax.xlane.f32.xlu1 %v820_v38  ;;  %818 = vmax.xlane.f32.xlu0 %v817_v39  ;;  %v553_v42 = vpop.f32.mrb[22].mxu0  ;;  %v599_v43 = vpop.f32.mrb[22].mxu1 }
 0x108   :  { %v1934_v44 = vpop.f32.mrb[23].mxu0  ;;  %v1940_v45 = vpop.f32.mrb[23].mxu1 }
 0x10d   :  { %v2384_v46 = vpop.f32.mrb[24].mxu0  ;;  %v2386_v47 = vpop.f32.mrb[24].mxu1 }
 0x10e   :  { %v826_v48 = vsel %vm786_vm2, %v2386_v47, -inf  ;;  %v823_v51 = vsel %vm786_vm2, %v2384_v46, -inf  ;;  %v1945_v52 = vpop.f32.mrb[25].mxu0  ;;  %v1951_v53 = vpop.f32.mrb[25].mxu1 }
 0x10f   :  { %827 = vmax.xlane.f32.xlu1 %v826_v48  ;;  %824 = vmax.xlane.f32.xlu0 %v823_v51  ;;  %v645_v54 = vpop.f32.mrb[26].mxu0  ;;  %v691_v55 = vpop.f32.mrb[26].mxu1 }
 0x110   :  { %v1946_v56 = vpop.f32.mrb[27].mxu0  ;;  %v1952_v57 = vpop.f32.mrb[27].mxu1 }
 0x115   :  { %v2392_v58 = vpop.f32.mrb[28].mxu0  ;;  %v2394_v61 = vpop.f32.mrb[28].mxu1 }
 0x116   :  { %v832_v62 = vsel %vm786_vm2, %v2394_v61, -inf  ;;  %v829_v63 = vsel %vm786_vm2, %v2392_v58, -inf  ;;  %v1957_v1 = vpop.f32.mrb[29].mxu0  ;;  %v1963_v2 = vpop.f32.mrb[29].mxu1 }
 0x117   :  { %833 = vmax.xlane.f32.xlu1 %v832_v62  ;;  %830 = vmax.xlane.f32.xlu0 %v829_v63  ;;  %v737_v3 = vpop.f32.mrb[30].mxu0  ;;  %v783_v4 = vpop.f32.mrb[30].mxu1  ;;  %v995_v63 = vld [vmem:[%s2790_s2] sm:$0xf] }
 0x118   :  { %v1958_v5 = vpop.f32.mrb[31].mxu0  ;;  %v1964_v8 = vpop.f32.mrb[31].mxu1  ;;  %v1016_v3 = vsel %vm1014_vm3, %v995_v63, 0 }
 0x119   :  { %1966 = vmatpush3.bf16.msra.mxu0 %v1016_v3  ;;  %v1009_v3 = vld [vmem:[%s2790_s2 + $0x38] sm:$0xf] }
 0x11a   :  { %1977 = vmatprep.subr.bf16.mxu0 %v2127_v0 }
 0x16c   :  { %v789_v9 = vpop.xlane.xlu0 %788 }
 0x16d   :  { %v835_v10 = vsub.f32 %v2336_v49, %v789_v9 }
 0x16f   :  { %v851_v11 = vmul.f32 1.442695, %v835_v10 }
 0x170   :  { %v792_v12 = vpop.xlane.xlu0 %791 }
 0x171   :  { %2063 = vpow2.f32 %v851_v11  ;;  %v836_v13 = vsub.f32 %v2338_v50, %v792_v12 }
 0x173   :  { %v853_v14 = vmul.f32 1.442695, %v836_v13 }
 0x174   :  { %v795_v15 = vpop.xlane.xlu1 %794 }
 0x175   :  { %2065 = vpow2.f32 %v853_v14  ;;  %v837_v18 = vsub.f32 %v2344_v59, %v795_v15  ;;  %v997_v14 = vld [vmem:[%s2790_s2 + $0x8] sm:$0xf] }
 0x177   :  { %v855_v19 = vmul.f32 1.442695, %v837_v18 }
 0x178   :  { %v798_v20 = vpop.xlane.xlu1 %797 }
 0x179   :  { %2067 = vpow2.f32 %v855_v19  ;;  %v838_v21 = vsub.f32 %v2346_v60, %v798_v20  ;;  %v2468_v19 = vsel %vm1014_vm3, %v997_v14, 0 }
 0x17b   :  { %v2404_v22 = vpop.eup %2063  ;;  %v857_v23 = vmul.f32 1.442695, %v838_v21 }
 0x17c   :  { %v804_v24 = vpop.xlane.xlu1 %803  ;;  %v801_v49 = vpop.xlane.xlu0 %800  ;;  %v883_v25 = vsel %vm786_vm2, %v2404_v22, 0.0 }
 0x17d   :  { %2069 = vpow2.f32 %v857_v23  ;;  %v840_v50 = vsub.f32 %v2354_v7, %v804_v24  ;;  %v839_v28 = vsub.f32 %v2352_v6, %v801_v49  ;;  %884 = vadd.xlane.f32.xlu0 %v883_v25 }
 0x17f   :  { %v2410_v59 = vpop.eup %2065  ;;  %v861_v29 = vmul.f32 1.442695, %v840_v50  ;;  %v859_v30 = vmul.f32 1.442695, %v839_v28 }
 0x180   :  { %v886_v60 = vsel %vm786_vm2, %v2410_v59, 0.0 }
 0x181   :  { %2071 = vpow2.f32 %v861_v29  ;;  %887 = vadd.xlane.f32.xlu1 %v886_v60  ;;  %v999_v29 = vld [vmem:[%s2790_s2 + $0x10] sm:$0xf] }
 0x182   :  { %2073 = vpow2.f32 %v859_v30 }
 0x183   :  { %v2414_v31 = vpop.eup %2067 }
 0x184   :  { %v810_v32 = vpop.xlane.xlu1 %809  ;;  %v807_v33 = vpop.xlane.xlu0 %806  ;;  %v889_v7 = vsel %vm786_vm2, %v2414_v31, 0.0 }
 0x185   :  { %v842_v6 = vsub.f32 %v2362_v17, %v810_v32  ;;  %v841_v34 = vsub.f32 %v2360_v16, %v807_v33  ;;  %890 = vadd.xlane.f32.xlu0 %v889_v7  ;;  %v2490_v32 = vsel %vm1014_vm3, %v999_v29, 0 }
 0x187   :  { %v2420_v35 = vpop.eup %2069  ;;  %v865_v38 = vmul.f32 1.442695, %v842_v6  ;;  %v863_v39 = vmul.f32 1.442695, %v841_v34 }
 0x188   :  { %v892_v40 = vsel %vm786_vm2, %v2420_v35, 0.0 }
 0x189   :  { %2075 = vpow2.f32 %v865_v38  ;;  %893 = vadd.xlane.f32.xlu1 %v892_v40  ;;  %v1001_v38 = vld [vmem:[%s2790_s2 + $0x18] sm:$0xf]  ;;  %v1002_v40 = vld [vmem:[%s2790_s2 + $0x1c] sm:$0xf] }
 0x18a   :  { %2077 = vpow2.f32 %v863_v39  ;;  %v2510_v39 = vsel %vm1014_vm3, %v1001_v38, 0 }
 0x18b   :  { %v2424_v41 = vpop.eup %2071 }
 0x18c   :  { %v2426_v42 = vpop.eup %2073  ;;  %v816_v43 = vpop.xlane.xlu1 %815  ;;  %v898_v16 = vsel %vm786_vm2, %v2424_v41, 0.0 }
 0x18d   :  { %v813_v44 = vpop.xlane.xlu0 %812  ;;  %v844_v17 = vsub.f32 %v2370_v27, %v816_v43  ;;  %899 = vadd.xlane.f32.xlu1 %v898_v16  ;;  %v895_v48 = vsel %vm786_vm2, %v2426_v42, 0.0 }
 0x18e   :  { %v843_v45 = vsub.f32 %v2368_v26, %v813_v44  ;;  %896 = vadd.xlane.f32.xlu0 %v895_v48  ;;  %v2518_v44 = vsel %vm1014_vm3, %v1002_v40, 0  ;;  %v1003_v48 = vld [vmem:[%s2790_s2 + $0x20] sm:$0xf] }
 0x18f   :  { %v869_v51 = vmul.f32 1.442695, %v844_v17 }
 0x190   :  { %v867_v52 = vmul.f32 1.442695, %v843_v45 }
 0x191   :  { %2079 = vpow2.f32 %v869_v51  ;;  %v2530_v51 = vsel %vm1014_vm3, %v1003_v48, 0 }
 0x192   :  { %2081 = vpow2.f32 %v867_v52  ;;  %v1004_v52 = vld [vmem:[%s2790_s2 + $0x24] sm:$0xf] }
 0x193   :  { %v2434_v53 = vpop.eup %2075 }
 0x194   :  { %v2436_v54 = vpop.eup %2077  ;;  %v822_v55 = vpop.xlane.xlu1 %821  ;;  %v904_v27 = vsel %vm786_vm2, %v2434_v53, 0.0 }
 0x195   :  { %v819_v56 = vpop.xlane.xlu0 %818  ;;  %v846_v26 = vsub.f32 %v2378_v37, %v822_v55  ;;  %905 = vadd.xlane.f32.xlu1 %v904_v27  ;;  %v901_v62 = vsel %vm786_vm2, %v2436_v54, 0.0  ;;  %v2536_v55 = vsel %vm1014_vm3, %v1004_v52, 0 }
 0x196   :  { %v845_v57 = vsub.f32 %v2376_v36, %v819_v56  ;;  %902 = vadd.xlane.f32.xlu0 %v901_v62  ;;  %v996_v36 = vld [vmem:[%s2790_s2 + $0x4] sm:$0xf]  ;;  %v1005_v56 = vld [vmem:[%s2790_s2 + $0x28] sm:$0xf]  ;;  %v1007_v62 = vld [vmem:[%s2790_s2 + $0x30] sm:$0xf] }
 0x197   :  { %v873_v1 = vmul.f32 1.442695, %v846_v26  ;;  %v1062_v4 = vsel %vm1014_vm3, %v996_v36, 0  ;;  %v2542_v27 = vsel %vm1014_vm3, %v1005_v56, 0  ;;  %v1006_v26 = vld [vmem:[%s2790_s2 + $0x2c] sm:$0xf] }
 0x198   :  { %v871_v2 = vmul.f32 1.442695, %v845_v57  ;;  %1972 = vmatpush3.bf16.msra.mxu1 %v1062_v4  ;;  %v2548_v57 = vsel %vm1014_vm3, %v1006_v26, 0  ;;  %v2554_v63 = vsel %vm1014_vm3, %v1007_v62, 0  ;;  %v2566_v36 = vsel %vm1014_vm3, %v1009_v3, 0 }
 0x199   :  { %2083 = vpow2.f32 %v873_v1  ;;  %1983 = vmatprep.subr.bf16.mxu1 %v2127_v0  ;;  %v1008_v1 = vld [vmem:[%s2790_s2 + $0x34] sm:$0xf]  ;;  %v1010_v4 = vld [vmem:[%s2790_s2 + $0x3c] sm:$0xf] }
 0x19a   :  { %2085 = vpow2.f32 %v871_v2  ;;  %v2560_v2 = vsel %vm1014_vm3, %v1008_v1, 0 }
 0x19b   :  { %v2452_v37 = vpop.eup %2079 }
 0x19c   :  { %v2455_v5 = vpop.eup %2081  ;;  %v828_v8 = vpop.xlane.xlu1 %827  ;;  %v910_v10 = vsel %vm786_vm2, %v2452_v37, 0.0 }
 0x19d   :  { %v825_v9 = vpop.xlane.xlu0 %824  ;;  %v848_v11 = vsub.f32 %v2386_v47, %v828_v8  ;;  %911 = vadd.xlane.f32.xlu1 %v910_v10  ;;  %v907_v13 = vsel %vm786_vm2, %v2455_v5, 0.0  ;;  %v2572_v8 = vsel %vm1014_vm3, %v1010_v4, 0 }
 0x19e   :  { %v847_v12 = vsub.f32 %v2384_v46, %v825_v9  ;;  %908 = vadd.xlane.f32.xlu0 %v907_v13  ;;  %v998_v46 = vld [vmem:[%s2790_s2 + $0xc] sm:$0xf] }
 0x19f   :  { %v877_v15 = vmul.f32 1.442695, %v848_v11  ;;  %v2476_v20 = vsel %vm1014_vm3, %v998_v46, 0 }
 0x1a0   :  { %v875_v18 = vmul.f32 1.442695, %v847_v12 }
 0x1a1   :  { %2087 = vpow2.f32 %v877_v15 }
 0x1a2   :  { %2089 = vpow2.f32 %v875_v18 }
 0x1a3   :  { %v2473_v47 = vpop.eup %2083 }
 0x1a4   :  { %v2478_v21 = vpop.eup %2085  ;;  %v834_v23 = vpop.xlane.xlu1 %833  ;;  %v916_v49 = vsel %vm786_vm2, %v2473_v47, 0.0 }
 0x1a5   :  { %v831_v24 = vpop.xlane.xlu0 %830  ;;  %v850_v25 = vsub.f32 %v2394_v61, %v834_v23  ;;  %917 = vadd.xlane.f32.xlu1 %v916_v49  ;;  %v913_v28 = vsel %vm786_vm2, %v2478_v21, 0.0 }
 0x1a6   :  { %v849_v50 = vsub.f32 %v2392_v58, %v831_v24  ;;  %914 = vadd.xlane.f32.xlu0 %v913_v28  ;;  %v1000_v58 = vld [vmem:[%s2790_s2 + $0x14] sm:$0xf] }
 0x1a7   :  { %v881_v30 = vmul.f32 1.442695, %v850_v25  ;;  %v2498_v33 = vsel %vm1014_vm3, %v1000_v58, 0 }
 0x1a8   :  { %v879_v60 = vmul.f32 1.442695, %v849_v50 }
 0x1a9   :  { %2091 = vpow2.f32 %v881_v30 }
 0x1aa   :  { %2093 = vpow2.f32 %v879_v60 }
 0x1ab   :  { %v2495_v61 = vpop.eup %2087 }
 0x1ac   :  { %v2500_v7 = vpop.eup %2089  ;;  %v922_v6 = vsel %vm786_vm2, %v2495_v61, 0.0 }
 0x1ad   :  { %923 = vadd.xlane.f32.xlu1 %v922_v6  ;;  %v919_v34 = vsel %vm786_vm2, %v2500_v7, 0.0 }
 0x1ae   :  { %920 = vadd.xlane.f32.xlu0 %v919_v34 }
 0x1b3   :  { %v2515_v43 = vpop.eup %2091 }
 0x1b4   :  { %v2520_v16 = vpop.eup %2093  ;;  %v928_v17 = vsel %vm786_vm2, %v2515_v43, 0.0 }
 0x1b5   :  { %929 = vadd.xlane.f32.xlu1 %v928_v17  ;;  %v925_v45 = vsel %vm786_vm2, %v2520_v16, 0.0 }
 0x1b6   :  { %926 = vadd.xlane.f32.xlu0 %v925_v45 }
 0x20a   :  { %v885_v9 = vpop.xlane.xlu0 %884 }
 0x20b   :  { %2095 = vrcp.f32 %v885_v9 }
 0x20e   :  { %v888_v10 = vpop.xlane.xlu1 %887 }
 0x20f   :  { %2097 = vrcp.f32 %v888_v10 }
 0x212   :  { %v891_v11 = vpop.xlane.xlu0 %890 }
 0x213   :  { %2099 = vrcp.f32 %v891_v11 }
 0x215   :  { %v2096_v12 = vpop.eup %2095 }
 0x216   :  { %v947_v13 = vmul.f32 %v2096_v12, %v2404_v22  ;;  %v894_v14 = vpop.xlane.xlu1 %893 }
 0x217   :  { %2101 = vrcp.f32 %v894_v14 }
 0x218   :  { %963 = vst.msk [vmem:[%s2791_s3] sm:$0xff] %vm786_vm2, %v947_v13  ;;  %v979_v15 = vpack.c.bf16 %v947_v13, %v947_v13 }
 0x219   :  { %v2098_v18 = vpop.eup %2097 }
 0x21a   :  { %v948_v46 = vmul.f32 %v2098_v18, %v2410_v59  ;;  %v900_v23 = vpop.xlane.xlu1 %899  ;;  %1968 = vmatmul.mubr.msk.bf16.vlgmr.msra.gmra.mrb[32].mxu0 %vm786_vm2, %v979_v15 }
 0x21b   :  { %2103 = vrcp.f32 %v900_v23  ;;  %v897_v24 = vpop.xlane.xlu0 %896  ;;  %1978 = vmatpush3.bf16.msra.mxu0 %v2468_v19  ;;  %1979 = vmatprep.mubr.msk.bf16.mxu0 %vm2128_vm1, %v2127_v0 }
 0x21c   :  { %964 = vst.msk [vmem:[%s2791_s3 + $0x8] sm:$0xff] %vm786_vm2, %v948_v46  ;;  %2105 = vrcp.f32 %v897_v24  ;;  %v980_v22 = vpack.c.bf16 %v948_v46, %v948_v46  ;;  %1989 = vmatprep.subr.bf16.mxu0 %v2127_v0 }
 0x21d   :  { %v2100_v59 = vpop.eup %2099 }
 0x21e   :  { %v949_v49 = vmul.f32 %v2100_v59, %v2414_v31  ;;  %1974 = vmatmul.mubr.msk.bf16.vlgmr.msra.gmra.mrb[32].mxu1 %vm786_vm2, %v980_v22 }
 0x21f   :  { %1984 = vmatpush3.bf16.msra.mxu1 %v2476_v20  ;;  %1985 = vmatprep.mubr.msk.bf16.mxu1 %vm2128_vm1, %v2127_v0 }
 0x220   :  { %965 = vst.msk [vmem:[%s2791_s3 + $0x10] sm:$0xff] %vm786_vm2, %v949_v49  ;;  %v981_v19 = vpack.c.bf16 %v949_v49, %v949_v49  ;;  %1995 = vmatprep.subr.bf16.mxu1 %v2127_v0 }
 0x221   :  { %v2102_v25 = vpop.eup %2101 }
 0x222   :  { %v950_v50 = vmul.f32 %v2102_v25, %v2420_v35  ;;  %v906_v28 = vpop.xlane.xlu1 %905  ;;  %1980 = vmatmul.mubr.msk.bf16.vlgmr.msra.gmra.mrb[36].mxu0 %vm786_vm2, %v981_v19 }
 0x223   :  { %2107 = vrcp.f32 %v906_v28  ;;  %v903_v31 = vpop.xlane.xlu0 %902  ;;  %1990 = vmatpush3.bf16.msra.mxu0 %v2490_v32  ;;  %1991 = vmatprep.mubr.msk.bf16.mxu0 %vm2128_vm1, %v2127_v0 }
 0x224   :  { %966 = vst.msk [vmem:[%s2791_s3 + $0x18] sm:$0xff] %vm786_vm2, %v950_v50  ;;  %2109 = vrcp.f32 %v903_v31  ;;  %v982_v20 = vpack.c.bf16 %v950_v50, %v950_v50  ;;  %2001 = vmatprep.subr.bf16.mxu0 %v2127_v0 }
 0x225   :  { %v2104_v35 = vpop.eup %2103 }
 0x226   :  { %v2106_v29 = vpop.eup %2105  ;;  %v952_v30 = vmul.f32 %v2104_v35, %v2424_v41  ;;  %1986 = vmatmul.mubr.msk.bf16.vlgmr.msra.gmra.mrb[36].mxu1 %vm786_vm2, %v982_v20 }
 0x227   :  { %v951_v60 = vmul.f32 %v2106_v29, %v2426_v42  ;;  %1996 = vmatpush3.bf16.msra.mxu1 %v2498_v33  ;;  %1997 = vmatprep.mubr.msk.bf16.mxu1 %vm2128_vm1, %v2127_v0 }
 0x228   :  { %968 = vst.msk [vmem:[%s2791_s3 + $0x28] sm:$0xff] %vm786_vm2, %v952_v30  ;;  %2007 = vmatprep.subr.bf16.mxu1 %v2127_v0  ;;  %v984_v58 = vpack.c.bf16 %v952_v30, %v952_v30 }
 0x229   :  { %967 = vst.msk [vmem:[%s2791_s3 + $0x20] sm:$0xff] %vm786_vm2, %v951_v60  ;;  %v983_v41 = vpack.c.bf16 %v951_v60, %v951_v60 }
 0x22a   :  { %v912_v32 = vpop.xlane.xlu1 %911 }
 0x22b   :  { %2111 = vrcp.f32 %v912_v32  ;;  %1992 = vmatmul.mubr.msk.bf16.vlgmr.msra.gmra.mrb[40].mxu0 %vm786_vm2, %v983_v41  ;;  %v909_v42 = vpop.xlane.xlu0 %908 }
 0x22c   :  { %2113 = vrcp.f32 %v909_v42  ;;  %2002 = vmatpush3.bf16.msra.mxu0 %v2510_v39  ;;  %2003 = vmatprep.mubr.msk.bf16.mxu0 %vm2128_vm1, %v2127_v0 }
 0x22d   :  { %v2108_v33 = vpop.eup %2107  ;;  %2013 = vmatprep.subr.bf16.mxu0 %v2127_v0 }
 0x22e   :  { %v2110_v6 = vpop.eup %2109  ;;  %v954_v34 = vmul.f32 %v2108_v33, %v2434_v53  ;;  %1998 = vmatmul.mubr.msk.bf16.vlgmr.msra.gmra.mrb[40].mxu1 %vm786_vm2, %v984_v58 }
 0x22f   :  { %v953_v38 = vmul.f32 %v2110_v6, %v2436_v54  ;;  %2008 = vmatpush3.bf16.msra.mxu1 %v2518_v44  ;;  %2009 = vmatprep.mubr.msk.bf16.mxu1 %vm2128_vm1, %v2127_v0 }
 0x230   :  { %970 = vst.msk [vmem:[%s2791_s3 + $0x38] sm:$0xff] %vm786_vm2, %v954_v34  ;;  %2019 = vmatprep.subr.bf16.mxu1 %v2127_v0  ;;  %v986_v40 = vpack.c.bf16 %v954_v34, %v954_v34 }
 0x231   :  { %969 = vst.msk [vmem:[%s2791_s3 + $0x30] sm:$0xff] %vm786_vm2, %v953_v38  ;;  %v985_v53 = vpack.c.bf16 %v953_v38, %v953_v38 }
 0x232   :  { %v918_v39 = vpop.xlane.xlu1 %917 }
 0x233   :  { %2115 = vrcp.f32 %v918_v39  ;;  %2004 = vmatmul.mubr.msk.bf16.vlgmr.msra.gmra.mrb[44].mxu0 %vm786_vm2, %v985_v53  ;;  %v915_v54 = vpop.xlane.xlu0 %914 }
 0x234   :  { %2117 = vrcp.f32 %v915_v54  ;;  %2014 = vmatpush3.bf16.msra.mxu0 %v2530_v51  ;;  %2015 = vmatprep.mubr.msk.bf16.mxu0 %vm2128_vm1, %v2127_v0 }
 0x235   :  { %v2112_v44 = vpop.eup %2111  ;;  %2025 = vmatprep.subr.bf16.mxu0 %v2127_v0 }
 0x236   :  { %v2114_v17 = vpop.eup %2113  ;;  %v956_v45 = vmul.f32 %v2112_v44, %v2452_v37  ;;  %2010 = vmatmul.mubr.msk.bf16.vlgmr.msra.gmra.mrb[44].mxu1 %vm786_vm2, %v986_v40 }
 0x237   :  { %v955_v48 = vmul.f32 %v2114_v17, %v2455_v5  ;;  %2020 = vmatpush3.bf16.msra.mxu1 %v2536_v55  ;;  %2021 = vmatprep.mubr.msk.bf16.mxu1 %vm2128_vm1, %v2127_v0 }
 0x238   :  { %972 = vst.msk [vmem:[%s2791_s3 + $0x48] sm:$0xff] %vm786_vm2, %v956_v45  ;;  %2031 = vmatprep.subr.bf16.mxu1 %v2127_v0  ;;  %v988_v52 = vpack.c.bf16 %v956_v45, %v956_v45 }
 0x239   :  { %971 = vst.msk [vmem:[%s2791_s3 + $0x40] sm:$0xff] %vm786_vm2, %v955_v48  ;;  %v987_v37 = vpack.c.bf16 %v955_v48, %v955_v48 }
 0x23a   :  { %v924_v51 = vpop.xlane.xlu1 %923 }
 0x23b   :  { %2119 = vrcp.f32 %v924_v51  ;;  %2016 = vmatmul.mubr.msk.bf16.vlgmr.msra.gmra.mrb[48].mxu0 %vm786_vm2, %v987_v37  ;;  %v921_v5 = vpop.xlane.xlu0 %920 }
 0x23c   :  { %2121 = vrcp.f32 %v921_v5  ;;  %2026 = vmatpush3.bf16.msra.mxu0 %v2542_v27  ;;  %2027 = vmatprep.mubr.msk.bf16.mxu0 %vm2128_vm1, %v2127_v0 }
 0x23d   :  { %v2116_v55 = vpop.eup %2115  ;;  %2037 = vmatprep.subr.bf16.mxu0 %v2127_v0 }
 0x23e   :  { %v2118_v56 = vpop.eup %2117  ;;  %v958_v26 = vmul.f32 %v2116_v55, %v2473_v47  ;;  %2022 = vmatmul.mubr.msk.bf16.vlgmr.msra.gmra.mrb[48].mxu1 %vm786_vm2, %v988_v52 }
 0x23f   :  { %v957_v62 = vmul.f32 %v2118_v56, %v2478_v21  ;;  %2032 = vmatpush3.bf16.msra.mxu1 %v2548_v57  ;;  %2033 = vmatprep.mubr.msk.bf16.mxu1 %vm2128_vm1, %v2127_v0 }
 0x240   :  { %974 = vst.msk [vmem:[%s2791_s3 + $0x58] sm:$0xff] %vm786_vm2, %v958_v26  ;;  %2043 = vmatprep.subr.bf16.mxu1 %v2127_v0  ;;  %v990_v57 = vpack.c.bf16 %v958_v26, %v958_v26 }
 0x241   :  { %973 = vst.msk [vmem:[%s2791_s3 + $0x50] sm:$0xff] %vm786_vm2, %v957_v62  ;;  %v989_v47 = vpack.c.bf16 %v957_v62, %v957_v62 }
 0x242   :  { %v930_v27 = vpop.xlane.xlu1 %929 }
 0x243   :  { %2123 = vrcp.f32 %v930_v27  ;;  %2028 = vmatmul.mubr.msk.bf16.vlgmr.msra.gmra.mrb[52].mxu0 %vm786_vm2, %v989_v47  ;;  %v927_v21 = vpop.xlane.xlu0 %926 }
 0x244   :  { %2125 = vrcp.f32 %v927_v21  ;;  %2038 = vmatpush3.bf16.msra.mxu0 %v2554_v63  ;;  %2039 = vmatprep.mubr.msk.bf16.mxu0 %vm2128_vm1, %v2127_v0 }
 0x245   :  { %v2120_v1 = vpop.eup %2119  ;;  %2049 = vmatprep.subr.bf16.mxu0 %v2127_v0 }
 0x246   :  { %v2122_v3 = vpop.eup %2121  ;;  %v960_v4 = vmul.f32 %v2120_v1, %v2495_v61  ;;  %2034 = vmatmul.mubr.msk.bf16.vlgmr.msra.gmra.mrb[52].mxu1 %vm786_vm2, %v990_v57 }
 0x247   :  { %v959_v9 = vmul.f32 %v2122_v3, %v2500_v7  ;;  %2044 = vmatpush3.bf16.msra.mxu1 %v2560_v2  ;;  %2045 = vmatprep.mubr.msk.bf16.mxu1 %vm2128_vm1, %v2127_v0 }
 0x248   :  { %976 = vst.msk [vmem:[%s2791_s3 + $0x68] sm:$0xff] %vm786_vm2, %v960_v4  ;;  %2055 = vmatprep.subr.bf16.mxu1 %v2127_v0  ;;  %v992_v7 = vpack.c.bf16 %v960_v4, %v960_v4 }
 0x249   :  { %975 = vst.msk [vmem:[%s2791_s3 + $0x60] sm:$0xff] %vm786_vm2, %v959_v9  ;;  %v991_v61 = vpack.c.bf16 %v959_v9, %v959_v9 }
 0x24b   :  { %2040 = vmatmul.mubr.msk.bf16.vlgmr.msra.gmra.mrb[56].mxu0 %vm786_vm2, %v991_v61 }
 0x24c   :  { %2050 = vmatpush3.bf16.msra.mxu0 %v2566_v36  ;;  %2051 = vmatprep.mubr.msk.bf16.mxu0 %vm2128_vm1, %v2127_v0 }
 0x24d   :  { %v2124_v63 = vpop.eup %2123 }
 0x24e   :  { %v2126_v2 = vpop.eup %2125  ;;  %v962_v10 = vmul.f32 %v2124_v63, %v2515_v43  ;;  %2046 = vmatmul.mubr.msk.bf16.vlgmr.msra.gmra.mrb[56].mxu1 %vm786_vm2, %v992_v7 }
 0x24f   :  { %v961_v11 = vmul.f32 %v2126_v2, %v2520_v16  ;;  %2056 = vmatpush3.bf16.msra.mxu1 %v2572_v8  ;;  %2057 = vmatprep.mubr.msk.bf16.mxu1 %vm2128_vm1, %v2127_v0 }
 0x250   :  { %978 = vst.msk [vmem:[%s2791_s3 + $0x78] sm:$0xff] %vm786_vm2, %v962_v10  ;;  %v994_v36 = vpack.c.bf16 %v962_v10, %v962_v10 }
 0x251   :  { %977 = vst.msk [vmem:[%s2791_s3 + $0x70] sm:$0xff] %vm786_vm2, %v961_v11  ;;  %v993_v43 = vpack.c.bf16 %v961_v11, %v961_v11 }
 0x253   :  { %2052 = vmatmul.mubr.msk.bf16.vlgmr.msra.gmra.mrb[60].mxu0 %vm786_vm2, %v993_v43 }
 0x256   :  { %2058 = vmatmul.mubr.msk.bf16.vlgmr.msra.gmra.mrb[60].mxu1 %vm786_vm2, %v994_v36 }
 0x2ed   :  { %v1052_v16 = vpop.f32.mrb[32].mxu0 }
 0x2ee   :  { %1749 = vst.msk [vmem:[%s2792_s4] sm:$0xff] %vm1748_vm4, %v1052_v16  ;;  %v1969_v0 = vpop.f32.mrb[33].mxu0 }
 0x2ef   :  { %v1055_v8 = vpop.f32.mrb[34].mxu0 }
 0x2f0   :  { %v1970_v12 = vpop.f32.mrb[35].mxu0 }
 0x2f1   :  { %v1098_v13 = vpop.f32.mrb[32].mxu1 }
 0x2f2   :  { %1750 = vst.msk [vmem:[%s2792_s4 + $0x8] sm:$0xff] %vm1748_vm4, %v1098_v13  ;;  %v1975_v14 = vpop.f32.mrb[33].mxu1 }
 0x2f3   :  { %v1101_v15 = vpop.f32.mrb[34].mxu1 }
 0x2f4   :  { %v1976_v18 = vpop.f32.mrb[35].mxu1 }
 0x2f5   :  { %v1144_v46 = vpop.f32.mrb[36].mxu0 }
 0x2f6   :  { %1751 = vst.msk [vmem:[%s2792_s4 + $0x10] sm:$0xff] %vm1748_vm4, %v1144_v46  ;;  %v1981_v23 = vpop.f32.mrb[37].mxu0 }
 0x2f7   :  { %v1147_v24 = vpop.f32.mrb[38].mxu0 }
 0x2f8   :  { %v1982_v22 = vpop.f32.mrb[39].mxu0 }
 0x2f9   :  { %v1190_v59 = vpop.f32.mrb[36].mxu1 }
 0x2fa   :  { %1752 = vst.msk [vmem:[%s2792_s4 + $0x18] sm:$0xff] %vm1748_vm4, %v1190_v59  ;;  %v1987_v49 = vpop.f32.mrb[37].mxu1 }
 0x2fb   :  { %v1193_v19 = vpop.f32.mrb[38].mxu1 }
 0x2fc   :  { %v1988_v25 = vpop.f32.mrb[39].mxu1 }
 0x2fe   :  { %v1236_v50 = vpop.f32.mrb[40].mxu0 }
 0x2ff   :  { %1753 = vst.msk [vmem:[%s2792_s4 + $0x20] sm:$0xff] %vm1748_vm4, %v1236_v50  ;;  %v1993_v28 = vpop.f32.mrb[41].mxu0 }
 0x300   :  { %v1239_v31 = vpop.f32.mrb[42].mxu0 }
 0x301   :  { %v1994_v20 = vpop.f32.mrb[43].mxu0  ;;  %v1282_v35 = vpop.f32.mrb[40].mxu1 }
 0x302   :  { %1754 = vst.msk [vmem:[%s2792_s4 + $0x28] sm:$0xff] %vm1748_vm4, %v1282_v35  ;;  %v1999_v29 = vpop.f32.mrb[41].mxu1 }
 0x303   :  { %v1285_v30 = vpop.f32.mrb[42].mxu1 }
 0x304   :  { %v2000_v60 = vpop.f32.mrb[43].mxu1 }
 0x306   :  { %v1328_v41 = vpop.f32.mrb[44].mxu0 }
 0x307   :  { %1755 = vst.msk [vmem:[%s2792_s4 + $0x30] sm:$0xff] %vm1748_vm4, %v1328_v41  ;;  %v2005_v32 = vpop.f32.mrb[45].mxu0 }
 0x308   :  { %v1331_v42 = vpop.f32.mrb[46].mxu0 }
 0x309   :  { %v2006_v58 = vpop.f32.mrb[47].mxu0  ;;  %v1374_v33 = vpop.f32.mrb[44].mxu1 }
 0x30a   :  { %1756 = vst.msk [vmem:[%s2792_s4 + $0x38] sm:$0xff] %vm1748_vm4, %v1374_v33  ;;  %v2011_v6 = vpop.f32.mrb[45].mxu1 }
 0x30b   :  { %v1377_v34 = vpop.f32.mrb[46].mxu1 }
 0x30c   :  { %v2012_v38 = vpop.f32.mrb[47].mxu1 }
 0x30e   :  { %v1420_v53 = vpop.f32.mrb[48].mxu0 }
 0x30f   :  { %1757 = vst.msk [vmem:[%s2792_s4 + $0x40] sm:$0xff] %vm1748_vm4, %v1420_v53  ;;  %v2017_v39 = vpop.f32.mrb[49].mxu0 }
 0x310   :  { %v1423_v54 = vpop.f32.mrb[50].mxu0 }
 0x311   :  { %v2018_v40 = vpop.f32.mrb[51].mxu0  ;;  %v1466_v44 = vpop.f32.mrb[48].mxu1 }
 0x312   :  { %1758 = vst.msk [vmem:[%s2792_s4 + $0x48] sm:$0xff] %vm1748_vm4, %v1466_v44  ;;  %v2023_v17 = vpop.f32.mrb[49].mxu1 }
 0x313   :  { %v1469_v45 = vpop.f32.mrb[50].mxu1 }
 0x314   :  { %v2024_v48 = vpop.f32.mrb[51].mxu1 }
 0x316   :  { %v1512_v37 = vpop.f32.mrb[52].mxu0 }
 0x317   :  { %1759 = vst.msk [vmem:[%s2792_s4 + $0x50] sm:$0xff] %vm1748_vm4, %v1512_v37  ;;  %v2029_v51 = vpop.f32.mrb[53].mxu0 }
 0x318   :  { %v1515_v5 = vpop.f32.mrb[54].mxu0 }
 0x319   :  { %v2030_v52 = vpop.f32.mrb[55].mxu0  ;;  %v1558_v55 = vpop.f32.mrb[52].mxu1 }
 0x31a   :  { %1760 = vst.msk [vmem:[%s2792_s4 + $0x58] sm:$0xff] %vm1748_vm4, %v1558_v55  ;;  %v2035_v56 = vpop.f32.mrb[53].mxu1 }
 0x31b   :  { %v1561_v26 = vpop.f32.mrb[54].mxu1 }
 0x31c   :  { %v2036_v62 = vpop.f32.mrb[55].mxu1 }
 0x31e   :  { %v1604_v47 = vpop.f32.mrb[56].mxu0 }
 0x31f   :  { %1761 = vst.msk [vmem:[%s2792_s4 + $0x60] sm:$0xff] %vm1748_vm4, %v1604_v47  ;;  %v2041_v27 = vpop.f32.mrb[57].mxu0 }
 0x320   :  { %v1607_v21 = vpop.f32.mrb[58].mxu0 }
 0x321   :  { %v2042_v57 = vpop.f32.mrb[59].mxu0  ;;  %v1650_v1 = vpop.f32.mrb[56].mxu1 }
 0x322   :  { %1762 = vst.msk [vmem:[%s2792_s4 + $0x68] sm:$0xff] %vm1748_vm4, %v1650_v1  ;;  %v2047_v3 = vpop.f32.mrb[57].mxu1 }
 0x323   :  { %v1653_v4 = vpop.f32.mrb[58].mxu1 }
 0x324   :  { %v2048_v9 = vpop.f32.mrb[59].mxu1 }
 0x326   :  { %v1696_v61 = vpop.f32.mrb[60].mxu0 }
 0x327   :  { %1763 = vst.msk [vmem:[%s2792_s4 + $0x70] sm:$0xff] %vm1748_vm4, %v1696_v61  ;;  %v2053_v7 = vpop.f32.mrb[61].mxu0 }
 0x328   :  { %v1699_v63 = vpop.f32.mrb[62].mxu0 }
 0x329   :  { %v2054_v2 = vpop.f32.mrb[63].mxu0  ;;  %v1742_v10 = vpop.f32.mrb[60].mxu1 }
 0x32a   :  { %1764 = vst.msk [vmem:[%s2792_s4 + $0x78] sm:$0xff] %vm1748_vm4, %v1742_v10  ;;  %v2059_v11 = vpop.f32.mrb[61].mxu1 }
 0x32b   :  { %v1745_v43 = vpop.f32.mrb[62].mxu1 }
 0x32c   :  { %v2060_v36 = vpop.f32.mrb[63].mxu1 }

// kernel: colorization_forward.20
= control target key start
LH: loop header
LB: loop body
LE: loop exit
PB: predicated region body
PF: predicated region fallthrough
CT: control target
= control target key end

     0   :  { %s488_s12 = smov 0   ;;  %s490_s13 = smov 0   ;;  %s530_s0 = inlined_call_operand.vmem [shape: bf16[2,33,128], index: 0, kind: input, shape index: {}]   ;;  %s531_s1 = inlined_call_operand.vmem [shape: bf16[16,33], index: 1, kind: input, shape index: {}]   ;;  %s532_s2 = inlined_call_operand.vmem [shape: f32[16,1], index: 2, kind: input, shape index: {}]   ;;  %s533_s3 = inlined_call_operand.vmem [shape: f32[2,16,128], index: 3, kind: output, shape index: {}]  }
   0x1   :  { %s492_s14 = smov 0  }
   0x2 LB: > { %s25_s15 = sadd.s32 1, %s459_s13  ;;  %p382_p0 = scmp.ge.s32.totalorder %s463_s14, 1  ;;  %s463_s14 = sphi %s492_s14, %s13_s14   ;;  %s459_s13 = sphi %s490_s13, %s535_s13   ;;  %s455_s12 = sphi %s488_s12, %s534_s12  }
   0x3   : > { %p27_p1 = scmp.ge.s32.totalorder %s25_s15, 2  ;;  %p156_p2 = scmp.lt.s32.totalorder %s463_s14, 3 }
   0x5   : > { %s537_s15 = smov (%p27_p1, %s25_s15), 0  ;;  %p157_p3 = pnand %p382_p0, %p156_p2 }
   0x6   : > { %p186_p4 = scmp.lt.s32.totalorder (!%p157_p3), %s455_s12, 1  ;;  %v465_v0 = vmov (!%p157_p3), 0.0   ;;  %vm466_vm0 = vmmov (!%p157_p3), 0   ;;  %v467_v1 = vmov (!%p157_p3), 0   ;;  %v210_v2 = vld [vmem:[%s532_s2] sm:$0xff] (!%p157_p3)  ;;  %v211_v3 = vld [vmem:[%s532_s2 + $0x8] sm:$0xff] (!%p157_p3) }
   0x7   : > { %160 = sbr.rel (%p157_p3) target bundleno = 247 (0xf7), region = 32  ;;  %398 = vmatprep.subr.bf16.mxu0 (!%p157_p3), %v465_v0  ;;  %404 = vmatprep.mubr.msk.bf16.mxu0 (!%p157_p3), %vm466_vm0, %v465_v0  ;;  %vm246_vm1 = vcmask (!%p157_p3), 1040384   ;;  %v440_v9 = vld [vmem:[%s531_s1] sm:$0xff] (!%p157_p3)   ;;  %vm242_vm2 = vcmask (!%p157_p3), 269312  }
   0x8   : > { %436 = vset.pattern.permute.xlu0 (!%p157_p3), %v467_v1  ;;  %v248_v7 = vsel (!%p157_p3), %vm246_vm1, 65535, %v467_v1 }
   0x9   : > { %214 = vperm.xlu0 (!%p157_p3), %436, %v210_v2  }
   0xd   : > { %219 = vperm.xlu0 (!%p157_p3), %436, %v211_v3  }
   0xe   : > { %s539_s12 = smov (!%p186_p4, %s455_s12), 1 }
   0xf   : > { %s408_s18 = smul.u32 20, %s539_s12  ;;  %s393_s26 = sshll.u32 %s539_s12, 4 }
  0x10   : > { %s201_s29 = scalar_lea.vmem %s533_s3, %s393_s26 }
  0x11   : > { %s193_s23 = scalar_lea.vmem %s530_s0, %s408_s18 }
  0x12   : > { %v437_v4 = vld [vmem:[%s193_s23] sm:$0xff]   ;;  %v438_v5 = vld [vmem:[%s193_s23 + $0x8] sm:$0xff]   ;;  %v439_v6 = vld [vmem:[%s193_s23 + $0x10] ss:$0 sps:$4 sm:$0x11]  }
  0x13   : > { %399 = vmatpush3.bf16.msra.mxu0 %v437_v4  ;;  %v250_v8 = vand.u32 %v439_v6, %v248_v7 }
  0x14   : > { %400 = vmatprep.subr.bf16.mxu0 %v465_v0 }
  0x17   : > { %401 = vmatpush3.bf16.msra.mxu0 %v438_v5 }
  0x18   : > { %402 = vmatprep.subr.bf16.mxu0 %v465_v0 }
  0x1b   : > { %403 = vmatpush3.bf16.msra.mxu0 %v250_v8 }
  0x1e   : > { %405 = vmatmul.mubr.msk.bf16.vlgmr.msra.gmra.mrb[0].mxu0 %vm242_vm2, %v440_v9 }
  0x88   : > { %v215_v10 = vpop.permute.xlu0 %214 }
  0x8c   : > { %v220_v14 = vpop.permute.xlu0 %219 }
  0xf1   : > { %v286_v11 = vpop.f32.mrb[0].mxu0 }
  0xf2   : > { %v287_v12 = vadd.f32 %v286_v11, %v215_v10  ;;  %v406_v13 = vpop.f32.mrb[1].mxu0 }
  0xf3   : > { %v289_v15 = vpop.f32.mrb[2].mxu0 }
  0xf4   : > { %293 = vst [vmem:[%s201_s29] sm:$0xff] %v287_v12  ;;  %v290_v16 = vadd.f32 %v289_v15, %v220_v14  ;;  %v407_v17 = vpop.f32.mrb[3].mxu0 }
  0xf6   : > { %294 = vst [vmem:[%s201_s29 + $0x8] sm:$0xff] %v290_v16 }
  0xf7 PF: > { %s13_s14 = sadd.s32 1, %s463_s14   ;;  %s534_s12 = smov %s459_s13 }
  0xf8   : > { %p10_p5 = scmp.ge.s32.totalorder %s13_s14, 4   ;;  %s535_s13 = smov %s537_s15 }
  0xfa   :  { %12 = sbr.rel (!%p10_p5) target bundleno = 2 (0x2), region = 62 }

// kernel: colorization_forward.23
= control target key start
LH: loop header
LB: loop body
LE: loop exit
PB: predicated region body
PF: predicated region fallthrough
CT: control target
= control target key end

     0   :  { %s435_s12 = smov 0   ;;  %s437_s13 = smov 0   ;;  %s474_s0 = inlined_call_operand.vmem [shape: bf16[2,16,128], index: 0, kind: input, shape index: {}]   ;;  %s475_s1 = inlined_call_operand.vmem [shape: bf16[3,16], index: 1, kind: input, shape index: {}]   ;;  %s476_s2 = inlined_call_operand.vmem [shape: f32[3,1], index: 2, kind: input, shape index: {}]   ;;  %s477_s3 = inlined_call_operand.vmem [shape: f32[2,3,128], index: 3, kind: output, shape index: {}]  }
   0x1   :  { %s439_s14 = smov 0  }
   0x2 LB: > { %s25_s15 = sadd.s32 1, %s406_s13  ;;  %p342_p0 = scmp.ge.s32.totalorder %s410_s14, 1  ;;  %s410_s14 = sphi %s439_s14, %s13_s14   ;;  %s406_s13 = sphi %s437_s13, %s479_s13   ;;  %s402_s12 = sphi %s435_s12, %s478_s12  }
   0x3   : > { %p27_p1 = scmp.ge.s32.totalorder %s25_s15, 2  ;;  %p156_p2 = scmp.lt.s32.totalorder %s410_s14, 3 }
   0x5   : > { %s481_s15 = smov (%p27_p1, %s25_s15), 0  ;;  %p157_p3 = pnand %p342_p0, %p156_p2 }
   0x6   : > { %p185_p4 = scmp.lt.s32.totalorder (!%p157_p3), %s402_s12, 1  ;;  %v412_v0 = vmov (!%p157_p3), 0.0   ;;  %vm413_vm0 = vmmov (!%p157_p3), 0   ;;  %v204_v1 = vld [vmem:[%s476_s2] sm:$0x7] (!%p157_p3)  ;;  %v414_v2 = vmov (!%p157_p3), 0  }
   0x7   : > { %160 = sbr.rel (%p157_p3) target bundleno = 236 (0xec), region = 32  ;;  %353 = vmatprep.subr.bf16.mxu0 (!%p157_p3), %v412_v0  ;;  %355 = vmatprep.mubr.msk.bf16.mxu0 (!%p157_p3), %vm413_vm0, %v412_v0  ;;  %v201_v4 = vld [vmem:[%s475_s1] sm:$0x3] (!%p157_p3)  ;;  %vm216_vm1 = vcmask (!%p157_p3), 130048  }
   0x8   : > { %386 = vset.pattern.permute.xlu0 (!%p157_p3), %v414_v2 }
   0x9   : > { %207 = vperm.xlu0 (!%p157_p3), %386, %v204_v1  }
   0xe   : > { %s483_s12 = smov (!%p185_p4, %s402_s12), 1 }
   0xf   : > { %s350_s18 = sshll.u32 %s483_s12, 3  ;;  %s345_s24 = sshll.u32 %s483_s12, 2 }
  0x10   : > { %s192_s21 = scalar_lea.vmem %s474_s0, %s350_s18  ;;  %s199_s27 = scalar_lea.vmem %s477_s3, %s345_s24 }
  0x11   : > { %v387_v3 = vld [vmem:[%s192_s21] sm:$0xff]  }
  0x12   : > { %354 = vmatpush3.bf16.msra.mxu0 %v387_v3 }
  0x15   : > { %356 = vmatmul.mubr.msk.bf16.vlgmr.msra.gmra.mrb[0].mxu0 %vm216_vm1, %v201_v4 }
  0x88   : > { %v208_v5 = vpop.permute.xlu0 %207 }
  0xe8   : > { %v254_v6 = vpop.f32.mrb[0].mxu0 }
  0xe9   : > { %v255_v7 = vadd.f32 %v254_v6, %v208_v5  ;;  %v357_v8 = vpop.f32.mrb[1].mxu0 }
  0xea   : > { %v257_v9 = vpop.f32.mrb[2].mxu0 }
  0xeb   : > { %260 = vst [vmem:[%s199_s27] sm:$0x7] %v255_v7  ;;  %v358_v10 = vpop.f32.mrb[3].mxu0 }
  0xec PF: > { %s13_s14 = sadd.s32 1, %s410_s14   ;;  %s478_s12 = smov %s406_s13 }
  0xed   : > { %p10_p5 = scmp.ge.s32.totalorder %s13_s14, 4   ;;  %s479_s13 = smov %s481_s15 }
  0xef   :  { %12 = sbr.rel (!%p10_p5) target bundleno = 2 (0x2), region = 62 }

</bundles_post_ra>
